<compile_context>
chip_gen: v7x
topology: tpu7x:2x2x1
jax: 0.10.0
libtpu: 0.0.40
codegen_flags: <defaults>
</compile_context>

<pallas_src>
import math
from functools import partial

import jax
import jax.numpy as jnp
from jax.experimental import pallas as pl
from jax.experimental.pallas import tpu as pltpu


def _make_spconv_kernel(Cout, r, Cin, kh, kw, Hout, Wr):
    """Pure-FMA tap-loop conv + fused sub-pixel shuffle for one batch element."""

    def kernel(xe_ref, wl_ref, bl_ref, o_ref):
        # xe_ref: (1, Cin, H, W*r)        VMEM  lane-expanded input
        # wl_ref: (Cout, Cin*kh*kw, Wr)   VMEM  lane-interleaved weights
        # bl_ref: (Cout, Wr)              VMEM  lane-interleaved bias
        # o_ref : (1, Cout, Hout, Wr)     VMEM  final layout (shuffle fused)
        for c in range(Cout):
            acc = None
            t = 0
            for ci in range(Cin):
                for dh in range(kh):
                    for dw in range(kw):
                        # Output lane l = w*r + ri needs x[ci, h+dh, w+dw],
                        # which in the lane-expanded input is xe[ci, h+dh, l + dw*r].
                        xs = xe_ref[0, ci, dh:dh + Hout, dw * r:dw * r + Wr]
                        wrow = wl_ref[c, t:t + 1, :]                # (1, Wr)
                        term = xs.astype(jnp.float32) * wrow.astype(jnp.float32)
                        acc = term if acc is None else acc + term
                        t += 1
            acc = acc + bl_ref[c:c + 1, :].astype(jnp.float32)      # (1, Wr) broadcast
            o_ref[0, c, :, :] = acc.astype(o_ref.dtype)

    return kernel


def _spconv_pallas(xe, wlane, blane, *, Cout, r, kh, kw):
    B, Cin, H, WR_in = xe.shape
    W = WR_in // r
    Hout = H - kh + 1
    Wout = W - kw + 1
    Wr = Wout * r
    Ntaps = Cin * kh * kw

    kernel = _make_spconv_kernel(Cout, r, Cin, kh, kw, Hout, Wr)

    itemsize = xe.dtype.itemsize
    flops = 2 * B * Cout * Hout * Wr * Ntaps
    bytes_accessed = (xe.size + wlane.size + blane.size + B * Cout * Hout * Wr) * itemsize

    return pl.pallas_call(
        kernel,
        out_shape=jax.ShapeDtypeStruct((B, Cout, Hout, Wr), xe.dtype),
        grid=(B,),
        in_specs=[
            pl.BlockSpec((1, Cin, H, WR_in), lambda b: (b, 0, 0, 0)),
            pl.BlockSpec((Cout, Ntaps, Wr), lambda b: (0, 0, 0)),
            pl.BlockSpec((Cout, Wr), lambda b: (0, 0)),
        ],
        out_specs=pl.BlockSpec((1, Cout, Hout, Wr), lambda b: (b, 0, 0, 0)),
        compiler_params=pltpu.CompilerParams(
            dimension_semantics=("parallel",)),
        cost_estimate=pl.CostEstimate(
            flops=flops, transcendentals=0, bytes_accessed=bytes_accessed),
    )(xe, wlane, blane)


@partial(jax.jit, static_argnames=("out_channels", "r", "kernel_size"))
def spconv_transpose2d_forward(x, weight, bias, *, out_channels, r, kernel_size):
    kh, kw = kernel_size
    B, Cin, H, W = x.shape
    Wout = W - kw + 1
    Cout = out_channels
    Ntaps = Cin * kh * kw

    # Lane-expand x along W by r so the sub-pixel shuffle can be fused into the
    # kernel's output layout: xe[..., l] = x[..., l // r].
    xe = jnp.repeat(x, r, axis=-1) if r > 1 else x

    # Lane-interleaved weights: wlane[c, tap, w*r + ri] = weight[ri*Cout + c, ci, dh, dw]
    # (PyTorch layout: weight is (Cout*r, Cin, kh, kw) with O = ri*Cout + c.)
    w5 = weight.reshape(r, Cout, Cin, kh, kw).transpose(1, 2, 3, 4, 0)   # (Cout,Cin,kh,kw,r)
    w5 = w5.reshape(Cout, Ntaps, 1, r)
    wlane = jnp.broadcast_to(w5, (Cout, Ntaps, Wout, r)).reshape(Cout, Ntaps, Wout * r)
    wlane = wlane.astype(x.dtype)

    # Lane-interleaved bias: blane[c, w*r + ri] = bias[ri*Cout + c]
    b2 = bias.reshape(r, Cout).transpose(1, 0)[:, None, :]               # (Cout, 1, r)
    blane = jnp.broadcast_to(b2, (Cout, Wout, r)).reshape(Cout, Wout * r).astype(x.dtype)

    return _spconv_pallas(xe, wlane, blane, Cout=Cout, r=r, kh=kh, kw=kw)


class SPConvTranspose2dPallas:
    """JAX/Pallas re-implementation of D2NET.SPConvTranspose2d forward."""

    def __init__(self, in_channels, out_channels, kernel_size, r=1, *, key):
        if isinstance(kernel_size, int):
            kernel_size = (kernel_size, kernel_size)
        self.in_channels = in_channels
        self.out_channels = out_channels
        self.kernel_size = tuple(kernel_size)
        self.r = r
        kh, kw = self.kernel_size
        fan_in = in_channels * kh * kw
        bound = 1.0 / math.sqrt(fan_in)  # matches nn.Conv2d default uniform bound
        kw_key, kb_key = jax.random.split(key)
        # PyTorch Conv2d weight layout: (out_channels * r, in_channels, kH, kW)
        self.weight = jax.random.uniform(
            kw_key, (out_channels * r, in_channels, kh, kw),
            minval=-bound, maxval=bound, dtype=jnp.float32)
        self.bias = jax.random.uniform(
            kb_key, (out_channels * r,),
            minval=-bound, maxval=bound, dtype=jnp.float32)

    def __call__(self, x):
        return spconv_transpose2d_forward(
            x, self.weight, self.bias,
            out_channels=self.out_channels, r=self.r,
            kernel_size=self.kernel_size)


def _reference_forward(x, weight, bias, out_channels, r):
    """Pure-JAX reference mirroring the PyTorch module exactly."""
    out = jax.lax.conv_general_dilated(
        x, weight, window_strides=(1, 1), padding="VALID",
        dimension_numbers=("NCHW", "OIHW", "NCHW"))
    out = out + bias[None, :, None, None]
    B, nch, H, W = out.shape
    out = out.reshape(B, r, nch // r, H, W)
    out = out.transpose(0, 2, 3, 4, 1)
    out = out.reshape(B, nch // r, H, W * r)
    return out


if __name__ == "__main__":
    key = jax.random.PRNGKey(0)
    k_mod, k_x = jax.random.split(key)

    B, Cin, H, W = 2, 4, 16, 16
    out_channels, r, kernel_size = 4, 2, (1, 3)

    module = SPConvTranspose2dPallas(Cin, out_channels, kernel_size, r=r, key=k_mod)
    x = jax.random.normal(k_x, (B, Cin, H, W), dtype=jnp.float32)

    y = jax.block_until_ready(module(x))

    y_ref = _reference_forward(x, module.weight, module.bias, out_channels, r)
    assert y.shape == (B, out_channels, H - kernel_size[0] + 1,
                       (W - kernel_size[1] + 1) * r), y.shape
    assert jnp.allclose(y, y_ref, atol=1e-5, rtol=1e-5), "mismatch vs reference"

    print("KERNEL_OK")
</pallas_src>

<mosaic_0001>
module attributes {stable_mosaic.version = 11 : i64} {
  func.func @kernel(%arg0: i32, %arg1: memref<1x4x16x32xf32, #tpu.memory_space<vmem>>, %arg2: memref<4x12x28xf32, #tpu.memory_space<vmem>>, %arg3: memref<4x28xf32, #tpu.memory_space<vmem>>, %arg4: memref<1x4x16x28xf32, #tpu.memory_space<vmem>>) attributes {dimension_semantics = [#tpu.dimension_semantics<parallel>], iteration_bounds = array<i64: 2>, scalar_prefetch = 0 : i64, scratch_operands = 0 : i64, tpu.core_type = #tpu.core_type<tc>, window_params = [{transform_indices = @transform_0, window_bounds = array<i64: 1, 4, 16, 32>}, {pipeline_mode = #tpu.pipeline_mode<synchronous>, transform_indices = @transform_1, window_bounds = array<i64: 4, 12, 28>}, {pipeline_mode = #tpu.pipeline_mode<synchronous>, transform_indices = @transform_2, window_bounds = array<i64: 4, 28>}, {transform_indices = @transform_3, window_bounds = array<i64: 1, 4, 16, 28>}]} {
    %c0 = arith.constant 0 : index
    %c0_0 = arith.constant 0 : index
    %c0_1 = arith.constant 0 : index
    %c0_2 = arith.constant 0 : index
    %0 = vector.load %arg1[%c0, %c0_0, %c0_1, %c0_2] : memref<1x4x16x32xf32, #tpu.memory_space<vmem>>, vector<1x1x16x28xf32>
    %1 = vector.shape_cast %0 : vector<1x1x16x28xf32> to vector<16x28xf32>
    %c0_3 = arith.constant 0 : index
    %c0_4 = arith.constant 0 : index
    %c0_5 = arith.constant 0 : index
    %2 = vector.load %arg2[%c0_3, %c0_4, %c0_5] : memref<4x12x28xf32, #tpu.memory_space<vmem>>, vector<1x1x28xf32>
    %3 = vector.shape_cast %2 : vector<1x1x28xf32> to vector<1x28xf32>
    %4 = vector.broadcast %3 : vector<1x28xf32> to vector<16x28xf32>
    %5 = arith.mulf %1, %4 : vector<16x28xf32>
    %c0_6 = arith.constant 0 : index
    %c0_7 = arith.constant 0 : index
    %c0_8 = arith.constant 0 : index
    %c2 = arith.constant 2 : index
    %6 = vector.load %arg1[%c0_6, %c0_7, %c0_8, %c2] : memref<1x4x16x32xf32, #tpu.memory_space<vmem>>, vector<1x1x16x28xf32>
    %7 = vector.shape_cast %6 : vector<1x1x16x28xf32> to vector<16x28xf32>
    %c0_9 = arith.constant 0 : index
    %c1 = arith.constant 1 : index
    %c0_10 = arith.constant 0 : index
    %8 = vector.load %arg2[%c0_9, %c1, %c0_10] : memref<4x12x28xf32, #tpu.memory_space<vmem>>, vector<1x1x28xf32>
    %9 = vector.shape_cast %8 : vector<1x1x28xf32> to vector<1x28xf32>
    %10 = vector.broadcast %9 : vector<1x28xf32> to vector<16x28xf32>
    %11 = arith.mulf %7, %10 : vector<16x28xf32>
    %12 = arith.addf %5, %11 : vector<16x28xf32>
    %c0_11 = arith.constant 0 : index
    %c0_12 = arith.constant 0 : index
    %c0_13 = arith.constant 0 : index
    %c4 = arith.constant 4 : index
    %13 = vector.load %arg1[%c0_11, %c0_12, %c0_13, %c4] : memref<1x4x16x32xf32, #tpu.memory_space<vmem>>, vector<1x1x16x28xf32>
    %14 = vector.shape_cast %13 : vector<1x1x16x28xf32> to vector<16x28xf32>
    %c0_14 = arith.constant 0 : index
    %c2_15 = arith.constant 2 : index
    %c0_16 = arith.constant 0 : index
    %15 = vector.load %arg2[%c0_14, %c2_15, %c0_16] : memref<4x12x28xf32, #tpu.memory_space<vmem>>, vector<1x1x28xf32>
    %16 = vector.shape_cast %15 : vector<1x1x28xf32> to vector<1x28xf32>
    %17 = vector.broadcast %16 : vector<1x28xf32> to vector<16x28xf32>
    %18 = arith.mulf %14, %17 : vector<16x28xf32>
    %19 = arith.addf %12, %18 : vector<16x28xf32>
    %c0_17 = arith.constant 0 : index
    %c1_18 = arith.constant 1 : index
    %c0_19 = arith.constant 0 : index
    %c0_20 = arith.constant 0 : index
    %20 = vector.load %arg1[%c0_17, %c1_18, %c0_19, %c0_20] : memref<1x4x16x32xf32, #tpu.memory_space<vmem>>, vector<1x1x16x28xf32>
    %21 = vector.shape_cast %20 : vector<1x1x16x28xf32> to vector<16x28xf32>
    %c0_21 = arith.constant 0 : index
    %c3 = arith.constant 3 : index
    %c0_22 = arith.constant 0 : index
    %22 = vector.load %arg2[%c0_21, %c3, %c0_22] : memref<4x12x28xf32, #tpu.memory_space<vmem>>, vector<1x1x28xf32>
    %23 = vector.shape_cast %22 : vector<1x1x28xf32> to vector<1x28xf32>
    %24 = vector.broadcast %23 : vector<1x28xf32> to vector<16x28xf32>
    %25 = arith.mulf %21, %24 : vector<16x28xf32>
    %26 = arith.addf %19, %25 : vector<16x28xf32>
    %c0_23 = arith.constant 0 : index
    %c1_24 = arith.constant 1 : index
    %c0_25 = arith.constant 0 : index
    %c2_26 = arith.constant 2 : index
    %27 = vector.load %arg1[%c0_23, %c1_24, %c0_25, %c2_26] : memref<1x4x16x32xf32, #tpu.memory_space<vmem>>, vector<1x1x16x28xf32>
    %28 = vector.shape_cast %27 : vector<1x1x16x28xf32> to vector<16x28xf32>
    %c0_27 = arith.constant 0 : index
    %c4_28 = arith.constant 4 : index
    %c0_29 = arith.constant 0 : index
    %29 = vector.load %arg2[%c0_27, %c4_28, %c0_29] : memref<4x12x28xf32, #tpu.memory_space<vmem>>, vector<1x1x28xf32>
    %30 = vector.shape_cast %29 : vector<1x1x28xf32> to vector<1x28xf32>
    %31 = vector.broadcast %30 : vector<1x28xf32> to vector<16x28xf32>
    %32 = arith.mulf %28, %31 : vector<16x28xf32>
    %33 = arith.addf %26, %32 : vector<16x28xf32>
    %c0_30 = arith.constant 0 : index
    %c1_31 = arith.constant 1 : index
    %c0_32 = arith.constant 0 : index
    %c4_33 = arith.constant 4 : index
    %34 = vector.load %arg1[%c0_30, %c1_31, %c0_32, %c4_33] : memref<1x4x16x32xf32, #tpu.memory_space<vmem>>, vector<1x1x16x28xf32>
    %35 = vector.shape_cast %34 : vector<1x1x16x28xf32> to vector<16x28xf32>
    %c0_34 = arith.constant 0 : index
    %c5 = arith.constant 5 : index
    %c0_35 = arith.constant 0 : index
    %36 = vector.load %arg2[%c0_34, %c5, %c0_35] : memref<4x12x28xf32, #tpu.memory_space<vmem>>, vector<1x1x28xf32>
    %37 = vector.shape_cast %36 : vector<1x1x28xf32> to vector<1x28xf32>
    %38 = vector.broadcast %37 : vector<1x28xf32> to vector<16x28xf32>
    %39 = arith.mulf %35, %38 : vector<16x28xf32>
    %40 = arith.addf %33, %39 : vector<16x28xf32>
    %c0_36 = arith.constant 0 : index
    %c2_37 = arith.constant 2 : index
    %c0_38 = arith.constant 0 : index
    %c0_39 = arith.constant 0 : index
    %41 = vector.load %arg1[%c0_36, %c2_37, %c0_38, %c0_39] : memref<1x4x16x32xf32, #tpu.memory_space<vmem>>, vector<1x1x16x28xf32>
    %42 = vector.shape_cast %41 : vector<1x1x16x28xf32> to vector<16x28xf32>
    %c0_40 = arith.constant 0 : index
    %c6 = arith.constant 6 : index
    %c0_41 = arith.constant 0 : index
    %43 = vector.load %arg2[%c0_40, %c6, %c0_41] : memref<4x12x28xf32, #tpu.memory_space<vmem>>, vector<1x1x28xf32>
    %44 = vector.shape_cast %43 : vector<1x1x28xf32> to vector<1x28xf32>
    %45 = vector.broadcast %44 : vector<1x28xf32> to vector<16x28xf32>
    %46 = arith.mulf %42, %45 : vector<16x28xf32>
    %47 = arith.addf %40, %46 : vector<16x28xf32>
    %c0_42 = arith.constant 0 : index
    %c2_43 = arith.constant 2 : index
    %c0_44 = arith.constant 0 : index
    %c2_45 = arith.constant 2 : index
    %48 = vector.load %arg1[%c0_42, %c2_43, %c0_44, %c2_45] : memref<1x4x16x32xf32, #tpu.memory_space<vmem>>, vector<1x1x16x28xf32>
    %49 = vector.shape_cast %48 : vector<1x1x16x28xf32> to vector<16x28xf32>
    %c0_46 = arith.constant 0 : index
    %c7 = arith.constant 7 : index
    %c0_47 = arith.constant 0 : index
    %50 = vector.load %arg2[%c0_46, %c7, %c0_47] : memref<4x12x28xf32, #tpu.memory_space<vmem>>, vector<1x1x28xf32>
    %51 = vector.shape_cast %50 : vector<1x1x28xf32> to vector<1x28xf32>
    %52 = vector.broadcast %51 : vector<1x28xf32> to vector<16x28xf32>
    %53 = arith.mulf %49, %52 : vector<16x28xf32>
    %54 = arith.addf %47, %53 : vector<16x28xf32>
    %c0_48 = arith.constant 0 : index
    %c2_49 = arith.constant 2 : index
    %c0_50 = arith.constant 0 : index
    %c4_51 = arith.constant 4 : index
    %55 = vector.load %arg1[%c0_48, %c2_49, %c0_50, %c4_51] : memref<1x4x16x32xf32, #tpu.memory_space<vmem>>, vector<1x1x16x28xf32>
    %56 = vector.shape_cast %55 : vector<1x1x16x28xf32> to vector<16x28xf32>
    %c0_52 = arith.constant 0 : index
    %c8 = arith.constant 8 : index
    %c0_53 = arith.constant 0 : index
    %57 = vector.load %arg2[%c0_52, %c8, %c0_53] : memref<4x12x28xf32, #tpu.memory_space<vmem>>, vector<1x1x28xf32>
    %58 = vector.shape_cast %57 : vector<1x1x28xf32> to vector<1x28xf32>
    %59 = vector.broadcast %58 : vector<1x28xf32> to vector<16x28xf32>
    %60 = arith.mulf %56, %59 : vector<16x28xf32>
    %61 = arith.addf %54, %60 : vector<16x28xf32>
    %c0_54 = arith.constant 0 : index
    %c3_55 = arith.constant 3 : index
    %c0_56 = arith.constant 0 : index
    %c0_57 = arith.constant 0 : index
    %62 = vector.load %arg1[%c0_54, %c3_55, %c0_56, %c0_57] : memref<1x4x16x32xf32, #tpu.memory_space<vmem>>, vector<1x1x16x28xf32>
    %63 = vector.shape_cast %62 : vector<1x1x16x28xf32> to vector<16x28xf32>
    %c0_58 = arith.constant 0 : index
    %c9 = arith.constant 9 : index
    %c0_59 = arith.constant 0 : index
    %64 = vector.load %arg2[%c0_58, %c9, %c0_59] : memref<4x12x28xf32, #tpu.memory_space<vmem>>, vector<1x1x28xf32>
    %65 = vector.shape_cast %64 : vector<1x1x28xf32> to vector<1x28xf32>
    %66 = vector.broadcast %65 : vector<1x28xf32> to vector<16x28xf32>
    %67 = arith.mulf %63, %66 : vector<16x28xf32>
    %68 = arith.addf %61, %67 : vector<16x28xf32>
    %c0_60 = arith.constant 0 : index
    %c3_61 = arith.constant 3 : index
    %c0_62 = arith.constant 0 : index
    %c2_63 = arith.constant 2 : index
    %69 = vector.load %arg1[%c0_60, %c3_61, %c0_62, %c2_63] : memref<1x4x16x32xf32, #tpu.memory_space<vmem>>, vector<1x1x16x28xf32>
    %70 = vector.shape_cast %69 : vector<1x1x16x28xf32> to vector<16x28xf32>
    %c0_64 = arith.constant 0 : index
    %c10 = arith.constant 10 : index
    %c0_65 = arith.constant 0 : index
    %71 = vector.load %arg2[%c0_64, %c10, %c0_65] : memref<4x12x28xf32, #tpu.memory_space<vmem>>, vector<1x1x28xf32>
    %72 = vector.shape_cast %71 : vector<1x1x28xf32> to vector<1x28xf32>
    %73 = vector.broadcast %72 : vector<1x28xf32> to vector<16x28xf32>
    %74 = arith.mulf %70, %73 : vector<16x28xf32>
    %75 = arith.addf %68, %74 : vector<16x28xf32>
    %c0_66 = arith.constant 0 : index
    %c3_67 = arith.constant 3 : index
    %c0_68 = arith.constant 0 : index
    %c4_69 = arith.constant 4 : index
    %76 = vector.load %arg1[%c0_66, %c3_67, %c0_68, %c4_69] : memref<1x4x16x32xf32, #tpu.memory_space<vmem>>, vector<1x1x16x28xf32>
    %77 = vector.shape_cast %76 : vector<1x1x16x28xf32> to vector<16x28xf32>
    %c0_70 = arith.constant 0 : index
    %c11 = arith.constant 11 : index
    %c0_71 = arith.constant 0 : index
    %78 = vector.load %arg2[%c0_70, %c11, %c0_71] : memref<4x12x28xf32, #tpu.memory_space<vmem>>, vector<1x1x28xf32>
    %79 = vector.shape_cast %78 : vector<1x1x28xf32> to vector<1x28xf32>
    %80 = vector.broadcast %79 : vector<1x28xf32> to vector<16x28xf32>
    %81 = arith.mulf %77, %80 : vector<16x28xf32>
    %82 = arith.addf %75, %81 : vector<16x28xf32>
    %c0_72 = arith.constant 0 : index
    %c0_73 = arith.constant 0 : index
    %83 = vector.load %arg3[%c0_72, %c0_73] : memref<4x28xf32, #tpu.memory_space<vmem>>, vector<1x28xf32>
    %84 = vector.broadcast %83 : vector<1x28xf32> to vector<16x28xf32>
    %85 = arith.addf %82, %84 : vector<16x28xf32>
    %c0_74 = arith.constant 0 : index
    %c0_75 = arith.constant 0 : index
    %c0_76 = arith.constant 0 : index
    %c0_77 = arith.constant 0 : index
    %86 = vector.load %arg4[%c0_74, %c0_75, %c0_76, %c0_77] : memref<1x4x16x28xf32, #tpu.memory_space<vmem>>, vector<1x1x16x28xf32>
    %87 = vector.shape_cast %86 : vector<1x1x16x28xf32> to vector<16x28xf32>
    %88 = vector.shape_cast %85 : vector<16x28xf32> to vector<1x1x16x28xf32>
    tpu.vector_store %arg4[%c0_74, %c0_75, %c0_76, %c0_77], %88 {strides = array<i32>} : memref<1x4x16x28xf32, #tpu.memory_space<vmem>>, vector<1x1x16x28xf32>,
    %c0_78 = arith.constant 0 : index
    %c0_79 = arith.constant 0 : index
    %c0_80 = arith.constant 0 : index
    %c0_81 = arith.constant 0 : index
    %89 = vector.load %arg1[%c0_78, %c0_79, %c0_80, %c0_81] : memref<1x4x16x32xf32, #tpu.memory_space<vmem>>, vector<1x1x16x28xf32>
    %90 = vector.shape_cast %89 : vector<1x1x16x28xf32> to vector<16x28xf32>
    %c1_82 = arith.constant 1 : index
    %c0_83 = arith.constant 0 : index
    %c0_84 = arith.constant 0 : index
    %91 = vector.load %arg2[%c1_82, %c0_83, %c0_84] : memref<4x12x28xf32, #tpu.memory_space<vmem>>, vector<1x1x28xf32>
    %92 = vector.shape_cast %91 : vector<1x1x28xf32> to vector<1x28xf32>
    %93 = vector.broadcast %92 : vector<1x28xf32> to vector<16x28xf32>
    %94 = arith.mulf %90, %93 : vector<16x28xf32>
    %c0_85 = arith.constant 0 : index
    %c0_86 = arith.constant 0 : index
    %c0_87 = arith.constant 0 : index
    %c2_88 = arith.constant 2 : index
    %95 = vector.load %arg1[%c0_85, %c0_86, %c0_87, %c2_88] : memref<1x4x16x32xf32, #tpu.memory_space<vmem>>, vector<1x1x16x28xf32>
    %96 = vector.shape_cast %95 : vector<1x1x16x28xf32> to vector<16x28xf32>
    %c1_89 = arith.constant 1 : index
    %c1_90 = arith.constant 1 : index
    %c0_91 = arith.constant 0 : index
    %97 = vector.load %arg2[%c1_89, %c1_90, %c0_91] : memref<4x12x28xf32, #tpu.memory_space<vmem>>, vector<1x1x28xf32>
    %98 = vector.shape_cast %97 : vector<1x1x28xf32> to vector<1x28xf32>
    %99 = vector.broadcast %98 : vector<1x28xf32> to vector<16x28xf32>
    %100 = arith.mulf %96, %99 : vector<16x28xf32>
    %101 = arith.addf %94, %100 : vector<16x28xf32>
    %c0_92 = arith.constant 0 : index
    %c0_93 = arith.constant 0 : index
    %c0_94 = arith.constant 0 : index
    %c4_95 = arith.constant 4 : index
    %102 = vector.load %arg1[%c0_92, %c0_93, %c0_94, %c4_95] : memref<1x4x16x32xf32, #tpu.memory_space<vmem>>, vector<1x1x16x28xf32>
    %103 = vector.shape_cast %102 : vector<1x1x16x28xf32> to vector<16x28xf32>
    %c1_96 = arith.constant 1 : index
    %c2_97 = arith.constant 2 : index
    %c0_98 = arith.constant 0 : index
    %104 = vector.load %arg2[%c1_96, %c2_97, %c0_98] : memref<4x12x28xf32, #tpu.memory_space<vmem>>, vector<1x1x28xf32>
    %105 = vector.shape_cast %104 : vector<1x1x28xf32> to vector<1x28xf32>
    %106 = vector.broadcast %105 : vector<1x28xf32> to vector<16x28xf32>
    %107 = arith.mulf %103, %106 : vector<16x28xf32>
    %108 = arith.addf %101, %107 : vector<16x28xf32>
    %c0_99 = arith.constant 0 : index
    %c1_100 = arith.constant 1 : index
    %c0_101 = arith.constant 0 : index
    %c0_102 = arith.constant 0 : index
    %109 = vector.load %arg1[%c0_99, %c1_100, %c0_101, %c0_102] : memref<1x4x16x32xf32, #tpu.memory_space<vmem>>, vector<1x1x16x28xf32>
    %110 = vector.shape_cast %109 : vector<1x1x16x28xf32> to vector<16x28xf32>
    %c1_103 = arith.constant 1 : index
    %c3_104 = arith.constant 3 : index
    %c0_105 = arith.constant 0 : index
    %111 = vector.load %arg2[%c1_103, %c3_104, %c0_105] : memref<4x12x28xf32, #tpu.memory_space<vmem>>, vector<1x1x28xf32>
    %112 = vector.shape_cast %111 : vector<1x1x28xf32> to vector<1x28xf32>
    %113 = vector.broadcast %112 : vector<1x28xf32> to vector<16x28xf32>
    %114 = arith.mulf %110, %113 : vector<16x28xf32>
    %115 = arith.addf %108, %114 : vector<16x28xf32>
    %c0_106 = arith.constant 0 : index
    %c1_107 = arith.constant 1 : index
    %c0_108 = arith.constant 0 : index
    %c2_109 = arith.constant 2 : index
    %116 = vector.load %arg1[%c0_106, %c1_107, %c0_108, %c2_109] : memref<1x4x16x32xf32, #tpu.memory_space<vmem>>, vector<1x1x16x28xf32>
    %117 = vector.shape_cast %116 : vector<1x1x16x28xf32> to vector<16x28xf32>
    %c1_110 = arith.constant 1 : index
    %c4_111 = arith.constant 4 : index
    %c0_112 = arith.constant 0 : index
    %118 = vector.load %arg2[%c1_110, %c4_111, %c0_112] : memref<4x12x28xf32, #tpu.memory_space<vmem>>, vector<1x1x28xf32>
    %119 = vector.shape_cast %118 : vector<1x1x28xf32> to vector<1x28xf32>
    %120 = vector.broadcast %119 : vector<1x28xf32> to vector<16x28xf32>
    %121 = arith.mulf %117, %120 : vector<16x28xf32>
    %122 = arith.addf %115, %121 : vector<16x28xf32>
    %c0_113 = arith.constant 0 : index
    %c1_114 = arith.constant 1 : index
    %c0_115 = arith.constant 0 : index
    %c4_116 = arith.constant 4 : index
    %123 = vector.load %arg1[%c0_113, %c1_114, %c0_115, %c4_116] : memref<1x4x16x32xf32, #tpu.memory_space<vmem>>, vector<1x1x16x28xf32>
    %124 = vector.shape_cast %123 : vector<1x1x16x28xf32> to vector<16x28xf32>
    %c1_117 = arith.constant 1 : index
    %c5_118 = arith.constant 5 : index
    %c0_119 = arith.constant 0 : index
    %125 = vector.load %arg2[%c1_117, %c5_118, %c0_119] : memref<4x12x28xf32, #tpu.memory_space<vmem>>, vector<1x1x28xf32>
    %126 = vector.shape_cast %125 : vector<1x1x28xf32> to vector<1x28xf32>
    %127 = vector.broadcast %126 : vector<1x28xf32> to vector<16x28xf32>
    %128 = arith.mulf %124, %127 : vector<16x28xf32>
    %129 = arith.addf %122, %128 : vector<16x28xf32>
    %c0_120 = arith.constant 0 : index
    %c2_121 = arith.constant 2 : index
    %c0_122 = arith.constant 0 : index
    %c0_123 = arith.constant 0 : index
    %130 = vector.load %arg1[%c0_120, %c2_121, %c0_122, %c0_123] : memref<1x4x16x32xf32, #tpu.memory_space<vmem>>, vector<1x1x16x28xf32>
    %131 = vector.shape_cast %130 : vector<1x1x16x28xf32> to vector<16x28xf32>
    %c1_124 = arith.constant 1 : index
    %c6_125 = arith.constant 6 : index
    %c0_126 = arith.constant 0 : index
    %132 = vector.load %arg2[%c1_124, %c6_125, %c0_126] : memref<4x12x28xf32, #tpu.memory_space<vmem>>, vector<1x1x28xf32>
    %133 = vector.shape_cast %132 : vector<1x1x28xf32> to vector<1x28xf32>
    %134 = vector.broadcast %133 : vector<1x28xf32> to vector<16x28xf32>
    %135 = arith.mulf %131, %134 : vector<16x28xf32>
    %136 = arith.addf %129, %135 : vector<16x28xf32>
    %c0_127 = arith.constant 0 : index
    %c2_128 = arith.constant 2 : index
    %c0_129 = arith.constant 0 : index
    %c2_130 = arith.constant 2 : index
    %137 = vector.load %arg1[%c0_127, %c2_128, %c0_129, %c2_130] : memref<1x4x16x32xf32, #tpu.memory_space<vmem>>, vector<1x1x16x28xf32>
    %138 = vector.shape_cast %137 : vector<1x1x16x28xf32> to vector<16x28xf32>
    %c1_131 = arith.constant 1 : index
    %c7_132 = arith.constant 7 : index
    %c0_133 = arith.constant 0 : index
    %139 = vector.load %arg2[%c1_131, %c7_132, %c0_133] : memref<4x12x28xf32, #tpu.memory_space<vmem>>, vector<1x1x28xf32>
    %140 = vector.shape_cast %139 : vector<1x1x28xf32> to vector<1x28xf32>
    %141 = vector.broadcast %140 : vector<1x28xf32> to vector<16x28xf32>
    %142 = arith.mulf %138, %141 : vector<16x28xf32>
    %143 = arith.addf %136, %142 : vector<16x28xf32>
    %c0_134 = arith.constant 0 : index
    %c2_135 = arith.constant 2 : index
    %c0_136 = arith.constant 0 : index
    %c4_137 = arith.constant 4 : index
    %144 = vector.load %arg1[%c0_134, %c2_135, %c0_136, %c4_137] : memref<1x4x16x32xf32, #tpu.memory_space<vmem>>, vector<1x1x16x28xf32>
    %145 = vector.shape_cast %144 : vector<1x1x16x28xf32> to vector<16x28xf32>
    %c1_138 = arith.constant 1 : index
    %c8_139 = arith.constant 8 : index
    %c0_140 = arith.constant 0 : index
    %146 = vector.load %arg2[%c1_138, %c8_139, %c0_140] : memref<4x12x28xf32, #tpu.memory_space<vmem>>, vector<1x1x28xf32>
    %147 = vector.shape_cast %146 : vector<1x1x28xf32> to vector<1x28xf32>
    %148 = vector.broadcast %147 : vector<1x28xf32> to vector<16x28xf32>
    %149 = arith.mulf %145, %148 : vector<16x28xf32>
    %150 = arith.addf %143, %149 : vector<16x28xf32>
    %c0_141 = arith.constant 0 : index
    %c3_142 = arith.constant 3 : index
    %c0_143 = arith.constant 0 : index
    %c0_144 = arith.constant 0 : index
    %151 = vector.load %arg1[%c0_141, %c3_142, %c0_143, %c0_144] : memref<1x4x16x32xf32, #tpu.memory_space<vmem>>, vector<1x1x16x28xf32>
    %152 = vector.shape_cast %151 : vector<1x1x16x28xf32> to vector<16x28xf32>
    %c1_145 = arith.constant 1 : index
    %c9_146 = arith.constant 9 : index
    %c0_147 = arith.constant 0 : index
    %153 = vector.load %arg2[%c1_145, %c9_146, %c0_147] : memref<4x12x28xf32, #tpu.memory_space<vmem>>, vector<1x1x28xf32>
    %154 = vector.shape_cast %153 : vector<1x1x28xf32> to vector<1x28xf32>
    %155 = vector.broadcast %154 : vector<1x28xf32> to vector<16x28xf32>
    %156 = arith.mulf %152, %155 : vector<16x28xf32>
    %157 = arith.addf %150, %156 : vector<16x28xf32>
    %c0_148 = arith.constant 0 : index
    %c3_149 = arith.constant 3 : index
    %c0_150 = arith.constant 0 : index
    %c2_151 = arith.constant 2 : index
    %158 = vector.load %arg1[%c0_148, %c3_149, %c0_150, %c2_151] : memref<1x4x16x32xf32, #tpu.memory_space<vmem>>, vector<1x1x16x28xf32>
    %159 = vector.shape_cast %158 : vector<1x1x16x28xf32> to vector<16x28xf32>
    %c1_152 = arith.constant 1 : index
    %c10_153 = arith.constant 10 : index
    %c0_154 = arith.constant 0 : index
    %160 = vector.load %arg2[%c1_152, %c10_153, %c0_154] : memref<4x12x28xf32, #tpu.memory_space<vmem>>, vector<1x1x28xf32>
    %161 = vector.shape_cast %160 : vector<1x1x28xf32> to vector<1x28xf32>
    %162 = vector.broadcast %161 : vector<1x28xf32> to vector<16x28xf32>
    %163 = arith.mulf %159, %162 : vector<16x28xf32>
    %164 = arith.addf %157, %163 : vector<16x28xf32>
    %c0_155 = arith.constant 0 : index
    %c3_156 = arith.constant 3 : index
    %c0_157 = arith.constant 0 : index
    %c4_158 = arith.constant 4 : index
    %165 = vector.load %arg1[%c0_155, %c3_156, %c0_157, %c4_158] : memref<1x4x16x32xf32, #tpu.memory_space<vmem>>, vector<1x1x16x28xf32>
    %166 = vector.shape_cast %165 : vector<1x1x16x28xf32> to vector<16x28xf32>
    %c1_159 = arith.constant 1 : index
    %c11_160 = arith.constant 11 : index
    %c0_161 = arith.constant 0 : index
    %167 = vector.load %arg2[%c1_159, %c11_160, %c0_161] : memref<4x12x28xf32, #tpu.memory_space<vmem>>, vector<1x1x28xf32>
    %168 = vector.shape_cast %167 : vector<1x1x28xf32> to vector<1x28xf32>
    %169 = vector.broadcast %168 : vector<1x28xf32> to vector<16x28xf32>
    %170 = arith.mulf %166, %169 : vector<16x28xf32>
    %171 = arith.addf %164, %170 : vector<16x28xf32>
    %c1_162 = arith.constant 1 : index
    %c0_163 = arith.constant 0 : index
    %172 = vector.load %arg3[%c1_162, %c0_163] : memref<4x28xf32, #tpu.memory_space<vmem>>, vector<1x28xf32>
    %173 = vector.broadcast %172 : vector<1x28xf32> to vector<16x28xf32>
    %174 = arith.addf %171, %173 : vector<16x28xf32>
    %c0_164 = arith.constant 0 : index
    %c1_165 = arith.constant 1 : index
    %c0_166 = arith.constant 0 : index
    %c0_167 = arith.constant 0 : index
    %175 = vector.load %arg4[%c0_164, %c1_165, %c0_166, %c0_167] : memref<1x4x16x28xf32, #tpu.memory_space<vmem>>, vector<1x1x16x28xf32>
    %176 = vector.shape_cast %175 : vector<1x1x16x28xf32> to vector<16x28xf32>
    %177 = vector.shape_cast %174 : vector<16x28xf32> to vector<1x1x16x28xf32>
    tpu.vector_store %arg4[%c0_164, %c1_165, %c0_166, %c0_167], %177 {strides = array<i32>} : memref<1x4x16x28xf32, #tpu.memory_space<vmem>>, vector<1x1x16x28xf32>,
    %c0_168 = arith.constant 0 : index
    %c0_169 = arith.constant 0 : index
    %c0_170 = arith.constant 0 : index
    %c0_171 = arith.constant 0 : index
    %178 = vector.load %arg1[%c0_168, %c0_169, %c0_170, %c0_171] : memref<1x4x16x32xf32, #tpu.memory_space<vmem>>, vector<1x1x16x28xf32>
    %179 = vector.shape_cast %178 : vector<1x1x16x28xf32> to vector<16x28xf32>
    %c2_172 = arith.constant 2 : index
    %c0_173 = arith.constant 0 : index
    %c0_174 = arith.constant 0 : index
    %180 = vector.load %arg2[%c2_172, %c0_173, %c0_174] : memref<4x12x28xf32, #tpu.memory_space<vmem>>, vector<1x1x28xf32>
    %181 = vector.shape_cast %180 : vector<1x1x28xf32> to vector<1x28xf32>
    %182 = vector.broadcast %181 : vector<1x28xf32> to vector<16x28xf32>
    %183 = arith.mulf %179, %182 : vector<16x28xf32>
    %c0_175 = arith.constant 0 : index
    %c0_176 = arith.constant 0 : index
    %c0_177 = arith.constant 0 : index
    %c2_178 = arith.constant 2 : index
    %184 = vector.load %arg1[%c0_175, %c0_176, %c0_177, %c2_178] : memref<1x4x16x32xf32, #tpu.memory_space<vmem>>, vector<1x1x16x28xf32>
    %185 = vector.shape_cast %184 : vector<1x1x16x28xf32> to vector<16x28xf32>
    %c2_179 = arith.constant 2 : index
    %c1_180 = arith.constant 1 : index
    %c0_181 = arith.constant 0 : index
    %186 = vector.load %arg2[%c2_179, %c1_180, %c0_181] : memref<4x12x28xf32, #tpu.memory_space<vmem>>, vector<1x1x28xf32>
    %187 = vector.shape_cast %186 : vector<1x1x28xf32> to vector<1x28xf32>
    %188 = vector.broadcast %187 : vector<1x28xf32> to vector<16x28xf32>
    %189 = arith.mulf %185, %188 : vector<16x28xf32>
    %190 = arith.addf %183, %189 : vector<16x28xf32>
    %c0_182 = arith.constant 0 : index
    %c0_183 = arith.constant 0 : index
    %c0_184 = arith.constant 0 : index
    %c4_185 = arith.constant 4 : index
    %191 = vector.load %arg1[%c0_182, %c0_183, %c0_184, %c4_185] : memref<1x4x16x32xf32, #tpu.memory_space<vmem>>, vector<1x1x16x28xf32>
    %192 = vector.shape_cast %191 : vector<1x1x16x28xf32> to vector<16x28xf32>
    %c2_186 = arith.constant 2 : index
    %c2_187 = arith.constant 2 : index
    %c0_188 = arith.constant 0 : index
    %193 = vector.load %arg2[%c2_186, %c2_187, %c0_188] : memref<4x12x28xf32, #tpu.memory_space<vmem>>, vector<1x1x28xf32>
    %194 = vector.shape_cast %193 : vector<1x1x28xf32> to vector<1x28xf32>
    %195 = vector.broadcast %194 : vector<1x28xf32> to vector<16x28xf32>
    %196 = arith.mulf %192, %195 : vector<16x28xf32>
    %197 = arith.addf %190, %196 : vector<16x28xf32>
    %c0_189 = arith.constant 0 : index
    %c1_190 = arith.constant 1 : index
    %c0_191 = arith.constant 0 : index
    %c0_192 = arith.constant 0 : index
    %198 = vector.load %arg1[%c0_189, %c1_190, %c0_191, %c0_192] : memref<1x4x16x32xf32, #tpu.memory_space<vmem>>, vector<1x1x16x28xf32>
    %199 = vector.shape_cast %198 : vector<1x1x16x28xf32> to vector<16x28xf32>
    %c2_193 = arith.constant 2 : index
    %c3_194 = arith.constant 3 : index
    %c0_195 = arith.constant 0 : index
    %200 = vector.load %arg2[%c2_193, %c3_194, %c0_195] : memref<4x12x28xf32, #tpu.memory_space<vmem>>, vector<1x1x28xf32>
    %201 = vector.shape_cast %200 : vector<1x1x28xf32> to vector<1x28xf32>
    %202 = vector.broadcast %201 : vector<1x28xf32> to vector<16x28xf32>
    %203 = arith.mulf %199, %202 : vector<16x28xf32>
    %204 = arith.addf %197, %203 : vector<16x28xf32>
    %c0_196 = arith.constant 0 : index
    %c1_197 = arith.constant 1 : index
    %c0_198 = arith.constant 0 : index
    %c2_199 = arith.constant 2 : index
    %205 = vector.load %arg1[%c0_196, %c1_197, %c0_198, %c2_199] : memref<1x4x16x32xf32, #tpu.memory_space<vmem>>, vector<1x1x16x28xf32>
    %206 = vector.shape_cast %205 : vector<1x1x16x28xf32> to vector<16x28xf32>
    %c2_200 = arith.constant 2 : index
    %c4_201 = arith.constant 4 : index
    %c0_202 = arith.constant 0 : index
    %207 = vector.load %arg2[%c2_200, %c4_201, %c0_202] : memref<4x12x28xf32, #tpu.memory_space<vmem>>, vector<1x1x28xf32>
    %208 = vector.shape_cast %207 : vector<1x1x28xf32> to vector<1x28xf32>
    %209 = vector.broadcast %208 : vector<1x28xf32> to vector<16x28xf32>
    %210 = arith.mulf %206, %209 : vector<16x28xf32>
    %211 = arith.addf %204, %210 : vector<16x28xf32>
    %c0_203 = arith.constant 0 : index
    %c1_204 = arith.constant 1 : index
    %c0_205 = arith.constant 0 : index
    %c4_206 = arith.constant 4 : index
    %212 = vector.load %arg1[%c0_203, %c1_204, %c0_205, %c4_206] : memref<1x4x16x32xf32, #tpu.memory_space<vmem>>, vector<1x1x16x28xf32>
    %213 = vector.shape_cast %212 : vector<1x1x16x28xf32> to vector<16x28xf32>
    %c2_207 = arith.constant 2 : index
    %c5_208 = arith.constant 5 : index
    %c0_209 = arith.constant 0 : index
    %214 = vector.load %arg2[%c2_207, %c5_208, %c0_209] : memref<4x12x28xf32, #tpu.memory_space<vmem>>, vector<1x1x28xf32>
    %215 = vector.shape_cast %214 : vector<1x1x28xf32> to vector<1x28xf32>
    %216 = vector.broadcast %215 : vector<1x28xf32> to vector<16x28xf32>
    %217 = arith.mulf %213, %216 : vector<16x28xf32>
    %218 = arith.addf %211, %217 : vector<16x28xf32>
    %c0_210 = arith.constant 0 : index
    %c2_211 = arith.constant 2 : index
    %c0_212 = arith.constant 0 : index
    %c0_213 = arith.constant 0 : index
    %219 = vector.load %arg1[%c0_210, %c2_211, %c0_212, %c0_213] : memref<1x4x16x32xf32, #tpu.memory_space<vmem>>, vector<1x1x16x28xf32>
    %220 = vector.shape_cast %219 : vector<1x1x16x28xf32> to vector<16x28xf32>
    %c2_214 = arith.constant 2 : index
    %c6_215 = arith.constant 6 : index
    %c0_216 = arith.constant 0 : index
    %221 = vector.load %arg2[%c2_214, %c6_215, %c0_216] : memref<4x12x28xf32, #tpu.memory_space<vmem>>, vector<1x1x28xf32>
    %222 = vector.shape_cast %221 : vector<1x1x28xf32> to vector<1x28xf32>
    %223 = vector.broadcast %222 : vector<1x28xf32> to vector<16x28xf32>
    %224 = arith.mulf %220, %223 : vector<16x28xf32>
    %225 = arith.addf %218, %224 : vector<16x28xf32>
    %c0_217 = arith.constant 0 : index
    %c2_218 = arith.constant 2 : index
    %c0_219 = arith.constant 0 : index
    %c2_220 = arith.constant 2 : index
    %226 = vector.load %arg1[%c0_217, %c2_218, %c0_219, %c2_220] : memref<1x4x16x32xf32, #tpu.memory_space<vmem>>, vector<1x1x16x28xf32>
    %227 = vector.shape_cast %226 : vector<1x1x16x28xf32> to vector<16x28xf32>
    %c2_221 = arith.constant 2 : index
    %c7_222 = arith.constant 7 : index
    %c0_223 = arith.constant 0 : index
    %228 = vector.load %arg2[%c2_221, %c7_222, %c0_223] : memref<4x12x28xf32, #tpu.memory_space<vmem>>, vector<1x1x28xf32>
    %229 = vector.shape_cast %228 : vector<1x1x28xf32> to vector<1x28xf32>
    %230 = vector.broadcast %229 : vector<1x28xf32> to vector<16x28xf32>
    %231 = arith.mulf %227, %230 : vector<16x28xf32>
    %232 = arith.addf %225, %231 : vector<16x28xf32>
    %c0_224 = arith.constant 0 : index
    %c2_225 = arith.constant 2 : index
    %c0_226 = arith.constant 0 : index
    %c4_227 = arith.constant 4 : index
    %233 = vector.load %arg1[%c0_224, %c2_225, %c0_226, %c4_227] : memref<1x4x16x32xf32, #tpu.memory_space<vmem>>, vector<1x1x16x28xf32>
    %234 = vector.shape_cast %233 : vector<1x1x16x28xf32> to vector<16x28xf32>
    %c2_228 = arith.constant 2 : index
    %c8_229 = arith.constant 8 : index
    %c0_230 = arith.constant 0 : index
    %235 = vector.load %arg2[%c2_228, %c8_229, %c0_230] : memref<4x12x28xf32, #tpu.memory_space<vmem>>, vector<1x1x28xf32>
    %236 = vector.shape_cast %235 : vector<1x1x28xf32> to vector<1x28xf32>
    %237 = vector.broadcast %236 : vector<1x28xf32> to vector<16x28xf32>
    %238 = arith.mulf %234, %237 : vector<16x28xf32>
    %239 = arith.addf %232, %238 : vector<16x28xf32>
    %c0_231 = arith.constant 0 : index
    %c3_232 = arith.constant 3 : index
    %c0_233 = arith.constant 0 : index
    %c0_234 = arith.constant 0 : index
    %240 = vector.load %arg1[%c0_231, %c3_232, %c0_233, %c0_234] : memref<1x4x16x32xf32, #tpu.memory_space<vmem>>, vector<1x1x16x28xf32>
    %241 = vector.shape_cast %240 : vector<1x1x16x28xf32> to vector<16x28xf32>
    %c2_235 = arith.constant 2 : index
    %c9_236 = arith.constant 9 : index
    %c0_237 = arith.constant 0 : index
    %242 = vector.load %arg2[%c2_235, %c9_236, %c0_237] : memref<4x12x28xf32, #tpu.memory_space<vmem>>, vector<1x1x28xf32>
    %243 = vector.shape_cast %242 : vector<1x1x28xf32> to vector<1x28xf32>
    %244 = vector.broadcast %243 : vector<1x28xf32> to vector<16x28xf32>
    %245 = arith.mulf %241, %244 : vector<16x28xf32>
    %246 = arith.addf %239, %245 : vector<16x28xf32>
    %c0_238 = arith.constant 0 : index
    %c3_239 = arith.constant 3 : index
    %c0_240 = arith.constant 0 : index
    %c2_241 = arith.constant 2 : index
    %247 = vector.load %arg1[%c0_238, %c3_239, %c0_240, %c2_241] : memref<1x4x16x32xf32, #tpu.memory_space<vmem>>, vector<1x1x16x28xf32>
    %248 = vector.shape_cast %247 : vector<1x1x16x28xf32> to vector<16x28xf32>
    %c2_242 = arith.constant 2 : index
    %c10_243 = arith.constant 10 : index
    %c0_244 = arith.constant 0 : index
    %249 = vector.load %arg2[%c2_242, %c10_243, %c0_244] : memref<4x12x28xf32, #tpu.memory_space<vmem>>, vector<1x1x28xf32>
    %250 = vector.shape_cast %249 : vector<1x1x28xf32> to vector<1x28xf32>
    %251 = vector.broadcast %250 : vector<1x28xf32> to vector<16x28xf32>
    %252 = arith.mulf %248, %251 : vector<16x28xf32>
    %253 = arith.addf %246, %252 : vector<16x28xf32>
    %c0_245 = arith.constant 0 : index
    %c3_246 = arith.constant 3 : index
    %c0_247 = arith.constant 0 : index
    %c4_248 = arith.constant 4 : index
    %254 = vector.load %arg1[%c0_245, %c3_246, %c0_247, %c4_248] : memref<1x4x16x32xf32, #tpu.memory_space<vmem>>, vector<1x1x16x28xf32>
    %255 = vector.shape_cast %254 : vector<1x1x16x28xf32> to vector<16x28xf32>
    %c2_249 = arith.constant 2 : index
    %c11_250 = arith.constant 11 : index
    %c0_251 = arith.constant 0 : index
    %256 = vector.load %arg2[%c2_249, %c11_250, %c0_251] : memref<4x12x28xf32, #tpu.memory_space<vmem>>, vector<1x1x28xf32>
    %257 = vector.shape_cast %256 : vector<1x1x28xf32> to vector<1x28xf32>
    %258 = vector.broadcast %257 : vector<1x28xf32> to vector<16x28xf32>
    %259 = arith.mulf %255, %258 : vector<16x28xf32>
    %260 = arith.addf %253, %259 : vector<16x28xf32>
    %c2_252 = arith.constant 2 : index
    %c0_253 = arith.constant 0 : index
    %261 = vector.load %arg3[%c2_252, %c0_253] : memref<4x28xf32, #tpu.memory_space<vmem>>, vector<1x28xf32>
    %262 = vector.broadcast %261 : vector<1x28xf32> to vector<16x28xf32>
    %263 = arith.addf %260, %262 : vector<16x28xf32>
    %c0_254 = arith.constant 0 : index
    %c2_255 = arith.constant 2 : index
    %c0_256 = arith.constant 0 : index
    %c0_257 = arith.constant 0 : index
    %264 = vector.load %arg4[%c0_254, %c2_255, %c0_256, %c0_257] : memref<1x4x16x28xf32, #tpu.memory_space<vmem>>, vector<1x1x16x28xf32>
    %265 = vector.shape_cast %264 : vector<1x1x16x28xf32> to vector<16x28xf32>
    %266 = vector.shape_cast %263 : vector<16x28xf32> to vector<1x1x16x28xf32>
    tpu.vector_store %arg4[%c0_254, %c2_255, %c0_256, %c0_257], %266 {strides = array<i32>} : memref<1x4x16x28xf32, #tpu.memory_space<vmem>>, vector<1x1x16x28xf32>,
    %c0_258 = arith.constant 0 : index
    %c0_259 = arith.constant 0 : index
    %c0_260 = arith.constant 0 : index
    %c0_261 = arith.constant 0 : index
    %267 = vector.load %arg1[%c0_258, %c0_259, %c0_260, %c0_261] : memref<1x4x16x32xf32, #tpu.memory_space<vmem>>, vector<1x1x16x28xf32>
    %268 = vector.shape_cast %267 : vector<1x1x16x28xf32> to vector<16x28xf32>
    %c3_262 = arith.constant 3 : index
    %c0_263 = arith.constant 0 : index
    %c0_264 = arith.constant 0 : index
    %269 = vector.load %arg2[%c3_262, %c0_263, %c0_264] : memref<4x12x28xf32, #tpu.memory_space<vmem>>, vector<1x1x28xf32>
    %270 = vector.shape_cast %269 : vector<1x1x28xf32> to vector<1x28xf32>
    %271 = vector.broadcast %270 : vector<1x28xf32> to vector<16x28xf32>
    %272 = arith.mulf %268, %271 : vector<16x28xf32>
    %c0_265 = arith.constant 0 : index
    %c0_266 = arith.constant 0 : index
    %c0_267 = arith.constant 0 : index
    %c2_268 = arith.constant 2 : index
    %273 = vector.load %arg1[%c0_265, %c0_266, %c0_267, %c2_268] : memref<1x4x16x32xf32, #tpu.memory_space<vmem>>, vector<1x1x16x28xf32>
    %274 = vector.shape_cast %273 : vector<1x1x16x28xf32> to vector<16x28xf32>
    %c3_269 = arith.constant 3 : index
    %c1_270 = arith.constant 1 : index
    %c0_271 = arith.constant 0 : index
    %275 = vector.load %arg2[%c3_269, %c1_270, %c0_271] : memref<4x12x28xf32, #tpu.memory_space<vmem>>, vector<1x1x28xf32>
    %276 = vector.shape_cast %275 : vector<1x1x28xf32> to vector<1x28xf32>
    %277 = vector.broadcast %276 : vector<1x28xf32> to vector<16x28xf32>
    %278 = arith.mulf %274, %277 : vector<16x28xf32>
    %279 = arith.addf %272, %278 : vector<16x28xf32>
    %c0_272 = arith.constant 0 : index
    %c0_273 = arith.constant 0 : index
    %c0_274 = arith.constant 0 : index
    %c4_275 = arith.constant 4 : index
    %280 = vector.load %arg1[%c0_272, %c0_273, %c0_274, %c4_275] : memref<1x4x16x32xf32, #tpu.memory_space<vmem>>, vector<1x1x16x28xf32>
    %281 = vector.shape_cast %280 : vector<1x1x16x28xf32> to vector<16x28xf32>
    %c3_276 = arith.constant 3 : index
    %c2_277 = arith.constant 2 : index
    %c0_278 = arith.constant 0 : index
    %282 = vector.load %arg2[%c3_276, %c2_277, %c0_278] : memref<4x12x28xf32, #tpu.memory_space<vmem>>, vector<1x1x28xf32>
    %283 = vector.shape_cast %282 : vector<1x1x28xf32> to vector<1x28xf32>
    %284 = vector.broadcast %283 : vector<1x28xf32> to vector<16x28xf32>
    %285 = arith.mulf %281, %284 : vector<16x28xf32>
    %286 = arith.addf %279, %285 : vector<16x28xf32>
    %c0_279 = arith.constant 0 : index
    %c1_280 = arith.constant 1 : index
    %c0_281 = arith.constant 0 : index
    %c0_282 = arith.constant 0 : index
    %287 = vector.load %arg1[%c0_279, %c1_280, %c0_281, %c0_282] : memref<1x4x16x32xf32, #tpu.memory_space<vmem>>, vector<1x1x16x28xf32>
    %288 = vector.shape_cast %287 : vector<1x1x16x28xf32> to vector<16x28xf32>
    %c3_283 = arith.constant 3 : index
    %c3_284 = arith.constant 3 : index
    %c0_285 = arith.constant 0 : index
    %289 = vector.load %arg2[%c3_283, %c3_284, %c0_285] : memref<4x12x28xf32, #tpu.memory_space<vmem>>, vector<1x1x28xf32>
    %290 = vector.shape_cast %289 : vector<1x1x28xf32> to vector<1x28xf32>
    %291 = vector.broadcast %290 : vector<1x28xf32> to vector<16x28xf32>
    %292 = arith.mulf %288, %291 : vector<16x28xf32>
    %293 = arith.addf %286, %292 : vector<16x28xf32>
    %c0_286 = arith.constant 0 : index
    %c1_287 = arith.constant 1 : index
    %c0_288 = arith.constant 0 : index
    %c2_289 = arith.constant 2 : index
    %294 = vector.load %arg1[%c0_286, %c1_287, %c0_288, %c2_289] : memref<1x4x16x32xf32, #tpu.memory_space<vmem>>, vector<1x1x16x28xf32>
    %295 = vector.shape_cast %294 : vector<1x1x16x28xf32> to vector<16x28xf32>
    %c3_290 = arith.constant 3 : index
    %c4_291 = arith.constant 4 : index
    %c0_292 = arith.constant 0 : index
    %296 = vector.load %arg2[%c3_290, %c4_291, %c0_292] : memref<4x12x28xf32, #tpu.memory_space<vmem>>, vector<1x1x28xf32>
    %297 = vector.shape_cast %296 : vector<1x1x28xf32> to vector<1x28xf32>
    %298 = vector.broadcast %297 : vector<1x28xf32> to vector<16x28xf32>
    %299 = arith.mulf %295, %298 : vector<16x28xf32>
    %300 = arith.addf %293, %299 : vector<16x28xf32>
    %c0_293 = arith.constant 0 : index
    %c1_294 = arith.constant 1 : index
    %c0_295 = arith.constant 0 : index
    %c4_296 = arith.constant 4 : index
    %301 = vector.load %arg1[%c0_293, %c1_294, %c0_295, %c4_296] : memref<1x4x16x32xf32, #tpu.memory_space<vmem>>, vector<1x1x16x28xf32>
    %302 = vector.shape_cast %301 : vector<1x1x16x28xf32> to vector<16x28xf32>
    %c3_297 = arith.constant 3 : index
    %c5_298 = arith.constant 5 : index
    %c0_299 = arith.constant 0 : index
    %303 = vector.load %arg2[%c3_297, %c5_298, %c0_299] : memref<4x12x28xf32, #tpu.memory_space<vmem>>, vector<1x1x28xf32>
    %304 = vector.shape_cast %303 : vector<1x1x28xf32> to vector<1x28xf32>
    %305 = vector.broadcast %304 : vector<1x28xf32> to vector<16x28xf32>
    %306 = arith.mulf %302, %305 : vector<16x28xf32>
    %307 = arith.addf %300, %306 : vector<16x28xf32>
    %c0_300 = arith.constant 0 : index
    %c2_301 = arith.constant 2 : index
    %c0_302 = arith.constant 0 : index
    %c0_303 = arith.constant 0 : index
    %308 = vector.load %arg1[%c0_300, %c2_301, %c0_302, %c0_303] : memref<1x4x16x32xf32, #tpu.memory_space<vmem>>, vector<1x1x16x28xf32>
    %309 = vector.shape_cast %308 : vector<1x1x16x28xf32> to vector<16x28xf32>
    %c3_304 = arith.constant 3 : index
    %c6_305 = arith.constant 6 : index
    %c0_306 = arith.constant 0 : index
    %310 = vector.load %arg2[%c3_304, %c6_305, %c0_306] : memref<4x12x28xf32, #tpu.memory_space<vmem>>, vector<1x1x28xf32>
    %311 = vector.shape_cast %310 : vector<1x1x28xf32> to vector<1x28xf32>
    %312 = vector.broadcast %311 : vector<1x28xf32> to vector<16x28xf32>
    %313 = arith.mulf %309, %312 : vector<16x28xf32>
    %314 = arith.addf %307, %313 : vector<16x28xf32>
    %c0_307 = arith.constant 0 : index
    %c2_308 = arith.constant 2 : index
    %c0_309 = arith.constant 0 : index
    %c2_310 = arith.constant 2 : index
    %315 = vector.load %arg1[%c0_307, %c2_308, %c0_309, %c2_310] : memref<1x4x16x32xf32, #tpu.memory_space<vmem>>, vector<1x1x16x28xf32>
    %316 = vector.shape_cast %315 : vector<1x1x16x28xf32> to vector<16x28xf32>
    %c3_311 = arith.constant 3 : index
    %c7_312 = arith.constant 7 : index
    %c0_313 = arith.constant 0 : index
    %317 = vector.load %arg2[%c3_311, %c7_312, %c0_313] : memref<4x12x28xf32, #tpu.memory_space<vmem>>, vector<1x1x28xf32>
    %318 = vector.shape_cast %317 : vector<1x1x28xf32> to vector<1x28xf32>
    %319 = vector.broadcast %318 : vector<1x28xf32> to vector<16x28xf32>
    %320 = arith.mulf %316, %319 : vector<16x28xf32>
    %321 = arith.addf %314, %320 : vector<16x28xf32>
    %c0_314 = arith.constant 0 : index
    %c2_315 = arith.constant 2 : index
    %c0_316 = arith.constant 0 : index
    %c4_317 = arith.constant 4 : index
    %322 = vector.load %arg1[%c0_314, %c2_315, %c0_316, %c4_317] : memref<1x4x16x32xf32, #tpu.memory_space<vmem>>, vector<1x1x16x28xf32>
    %323 = vector.shape_cast %322 : vector<1x1x16x28xf32> to vector<16x28xf32>
    %c3_318 = arith.constant 3 : index
    %c8_319 = arith.constant 8 : index
    %c0_320 = arith.constant 0 : index
    %324 = vector.load %arg2[%c3_318, %c8_319, %c0_320] : memref<4x12x28xf32, #tpu.memory_space<vmem>>, vector<1x1x28xf32>
    %325 = vector.shape_cast %324 : vector<1x1x28xf32> to vector<1x28xf32>
    %326 = vector.broadcast %325 : vector<1x28xf32> to vector<16x28xf32>
    %327 = arith.mulf %323, %326 : vector<16x28xf32>
    %328 = arith.addf %321, %327 : vector<16x28xf32>
    %c0_321 = arith.constant 0 : index
    %c3_322 = arith.constant 3 : index
    %c0_323 = arith.constant 0 : index
    %c0_324 = arith.constant 0 : index
    %329 = vector.load %arg1[%c0_321, %c3_322, %c0_323, %c0_324] : memref<1x4x16x32xf32, #tpu.memory_space<vmem>>, vector<1x1x16x28xf32>
    %330 = vector.shape_cast %329 : vector<1x1x16x28xf32> to vector<16x28xf32>
    %c3_325 = arith.constant 3 : index
    %c9_326 = arith.constant 9 : index
    %c0_327 = arith.constant 0 : index
    %331 = vector.load %arg2[%c3_325, %c9_326, %c0_327] : memref<4x12x28xf32, #tpu.memory_space<vmem>>, vector<1x1x28xf32>
    %332 = vector.shape_cast %331 : vector<1x1x28xf32> to vector<1x28xf32>
    %333 = vector.broadcast %332 : vector<1x28xf32> to vector<16x28xf32>
    %334 = arith.mulf %330, %333 : vector<16x28xf32>
    %335 = arith.addf %328, %334 : vector<16x28xf32>
    %c0_328 = arith.constant 0 : index
    %c3_329 = arith.constant 3 : index
    %c0_330 = arith.constant 0 : index
    %c2_331 = arith.constant 2 : index
    %336 = vector.load %arg1[%c0_328, %c3_329, %c0_330, %c2_331] : memref<1x4x16x32xf32, #tpu.memory_space<vmem>>, vector<1x1x16x28xf32>
    %337 = vector.shape_cast %336 : vector<1x1x16x28xf32> to vector<16x28xf32>
    %c3_332 = arith.constant 3 : index
    %c10_333 = arith.constant 10 : index
    %c0_334 = arith.constant 0 : index
    %338 = vector.load %arg2[%c3_332, %c10_333, %c0_334] : memref<4x12x28xf32, #tpu.memory_space<vmem>>, vector<1x1x28xf32>
    %339 = vector.shape_cast %338 : vector<1x1x28xf32> to vector<1x28xf32>
    %340 = vector.broadcast %339 : vector<1x28xf32> to vector<16x28xf32>
    %341 = arith.mulf %337, %340 : vector<16x28xf32>
    %342 = arith.addf %335, %341 : vector<16x28xf32>
    %c0_335 = arith.constant 0 : index
    %c3_336 = arith.constant 3 : index
    %c0_337 = arith.constant 0 : index
    %c4_338 = arith.constant 4 : index
    %343 = vector.load %arg1[%c0_335, %c3_336, %c0_337, %c4_338] : memref<1x4x16x32xf32, #tpu.memory_space<vmem>>, vector<1x1x16x28xf32>
    %344 = vector.shape_cast %343 : vector<1x1x16x28xf32> to vector<16x28xf32>
    %c3_339 = arith.constant 3 : index
    %c11_340 = arith.constant 11 : index
    %c0_341 = arith.constant 0 : index
    %345 = vector.load %arg2[%c3_339, %c11_340, %c0_341] : memref<4x12x28xf32, #tpu.memory_space<vmem>>, vector<1x1x28xf32>
    %346 = vector.shape_cast %345 : vector<1x1x28xf32> to vector<1x28xf32>
    %347 = vector.broadcast %346 : vector<1x28xf32> to vector<16x28xf32>
    %348 = arith.mulf %344, %347 : vector<16x28xf32>
    %349 = arith.addf %342, %348 : vector<16x28xf32>
    %c3_342 = arith.constant 3 : index
    %c0_343 = arith.constant 0 : index
    %350 = vector.load %arg3[%c3_342, %c0_343] : memref<4x28xf32, #tpu.memory_space<vmem>>, vector<1x28xf32>
    %351 = vector.broadcast %350 : vector<1x28xf32> to vector<16x28xf32>
    %352 = arith.addf %349, %351 : vector<16x28xf32>
    %c0_344 = arith.constant 0 : index
    %c3_345 = arith.constant 3 : index
    %c0_346 = arith.constant 0 : index
    %c0_347 = arith.constant 0 : index
    %353 = vector.load %arg4[%c0_344, %c3_345, %c0_346, %c0_347] : memref<1x4x16x28xf32, #tpu.memory_space<vmem>>, vector<1x1x16x28xf32>
    %354 = vector.shape_cast %353 : vector<1x1x16x28xf32> to vector<16x28xf32>
    %355 = vector.shape_cast %352 : vector<16x28xf32> to vector<1x1x16x28xf32>
    tpu.vector_store %arg4[%c0_344, %c3_345, %c0_346, %c0_347], %355 {strides = array<i32>} : memref<1x4x16x28xf32, #tpu.memory_space<vmem>>, vector<1x1x16x28xf32>,
    return
  }
  func.func @transform_0(%arg0: i32) -> (i32, i32, i32, i32) {
    %c0_i32 = arith.constant 0 : i32
    %c0_i32_0 = arith.constant 0 : i32
    %c0_i32_1 = arith.constant 0 : i32
    %c0_i32_2 = arith.constant 0 : i32
    return %arg0, %c0_i32, %c0_i32_0, %c0_i32_1 : i32, i32, i32, i32
  }
  func.func @transform_1(%arg0: i32) -> (i32, i32, i32) {
    %c0_i32 = arith.constant 0 : i32
    %c0_i32_0 = arith.constant 0 : i32
    %c0_i32_1 = arith.constant 0 : i32
    %c0_i32_2 = arith.constant 0 : i32
    return %c0_i32, %c0_i32_0, %c0_i32_1 : i32, i32, i32
  }
  func.func @transform_2(%arg0: i32) -> (i32, i32) {
    %c0_i32 = arith.constant 0 : i32
    %c0_i32_0 = arith.constant 0 : i32
    %c0_i32_1 = arith.constant 0 : i32
    return %c0_i32, %c0_i32_0 : i32, i32
  }
  func.func @transform_3(%arg0: i32) -> (i32, i32, i32, i32) {
    %c0_i32 = arith.constant 0 : i32
    %c0_i32_0 = arith.constant 0 : i32
    %c0_i32_1 = arith.constant 0 : i32
    %c0_i32_2 = arith.constant 0 : i32
    return %arg0, %c0_i32, %c0_i32_0, %c0_i32_1 : i32, i32, i32, i32
  }
}

</mosaic_0001>

<bundles_post_ra>
// kernel: spconv_transpose2d_forward.1
= control target key start
LH: loop header
LB: loop body
LE: loop exit
PB: predicated region body
PF: predicated region fallthrough
CT: control target
= control target key end

     0   :  { %8 = vsyncpa [#allocation3], 0  ;;  %s1902_s0 = inlined_call_operand.vmem [shape: f32[2,4,16,32], index: 0, kind: input, shape index: {}]   ;;  %s1903_s1 = inlined_call_operand.vmem [shape: f32[4,12,28], index: 1, kind: input, shape index: {}]   ;;  %s1904_s2 = inlined_call_operand.vmem [shape: f32[4,28], index: 2, kind: input, shape index: {}]   ;;  %s1905_s3 = inlined_call_operand.hbm [shape: f32[2,4,16,28], index: 3, kind: output, shape index: {}]  }
   0x1   :  { %10 = vsyncpa [#allocation3 + $0x1], 0  ;;  %s1399_s12 = smov 0   ;;  %s1401_s13 = smov 0  }
   0x2   :  { %s1403_s14 = smov 0   ;;  %s1405_s15 = smov 0  }
   0x3 LB: > { %s1420_s16 = sadd.s32 4294967295, %s1370_s15   ;;  %s1131_s17 = sadd.s32 4294967294, %s1370_s15   ;;  %s1370_s15 = sphi %s1405_s15, %s1911_s15   ;;  %s1366_s14 = sphi %s1403_s14, %s1910_s14   ;;  %s1362_s13 = sphi %s1401_s13, %s1909_s13   ;;  %s1358_s12 = sphi %s1399_s12, %s1908_s12  }
   0x4   : > { %s1424_s18 = sadd.s32 1, %s1370_s15   ;;  %s91_s19 = sadd.s32 1, %s1366_s14 }
   0x5   : > { %s88_s20 = ssub.s32 %s1370_s15, %s1424_s18  ;;  %p101_p0 = scmp.ne.s32.totalorder %s1366_s14, %s1362_s13 }
   0x6   : > { %p89_p1 = scmp.eq.s32.totalorder %s88_s20, 0  ;;  %p102_p2 = scmp.eq.s32.totalorder %s1420_s16, 1 }
   0x7   : > { %p107_p3 = scmp.ne.s32.totalorder %s1362_s13, %s1358_s12  ;;  %p108_p4 = scmp.eq.s32.totalorder %s1131_s17, 1 }
   0x8   : > { %s1435_s21 = scalar_select %p89_p1, %s1366_s14, %s91_s19  }
   0x9   : > { %p1437_p5 = por %p102_p2, %p101_p0  ;;  %p1441_p6 = por %p108_p4, %p107_p3 }
   0xa   : > { %p1134_p7 = scmp.ge.s32.totalorder %s1370_s15, 1  ;;  %p140_p8 = scmp.lt.s32.totalorder %s1370_s15, 3 }
   0xc   : > { %p141_p9 = pnand %p1134_p7, %p140_p8 }
   0xd   : > { %v1139_v0 = vld [vmem:[%s1903_s1 + $0x1] ss:$0 sm:$0xff] (!%p141_p9)  ;;  %v1140_v1 = vld [vmem:[%s1903_s1 + $0x2] ss:$0 sm:$0xff] (!%p141_p9)  ;;  %s1372_s28 = smov (!%p141_p9), 2   ;;  %s1373_s29 = smov (!%p141_p9), 4  }
   0xe   : > { %144 = sbr.rel (%p141_p9) target bundleno = 389 (0x185), region = 32  ;;  %184 = vrot.lane.b32.xlu0 (!%p141_p9), %v1139_v0, %s1372_s28  ;;  %205 = vrot.lane.b32.xlu1 (!%p141_p9), %v1140_v1, %s1373_s29  ;;  %v1144_v2 = vld [vmem:[%s1903_s1 + $0x4] ss:$0 sm:$0xff] (!%p141_p9)  ;;  %v1145_v3 = vld [vmem:[%s1903_s1 + $0x5] ss:$0 sm:$0xff] (!%p141_p9)  ;;  %p164_p10 = scmp.lt.s32.totalorder (!%p141_p9), %s1420_s16, 1 }
   0xf   : > { %v1149_v4 = vld [vmem:[%s1903_s1 + $0x7] ss:$0 sm:$0xff] (!%p141_p9)  ;;  %v1150_v5 = vld [vmem:[%s1903_s1 + $0x8] ss:$0 sm:$0xff] (!%p141_p9)  ;;  %v1155_v6 = vld [vmem:[%s1903_s1 + $0xb] ss:$0 sm:$0xff] (!%p141_p9) }
  0x10   : > { %v1154_v7 = vld [vmem:[%s1903_s1 + $0xa] ss:$0 sm:$0xff] (!%p141_p9)  ;;  %v1193_v8 = vld [vmem:[%s1903_s1 + $0x21] ss:$0 sm:$0xff] (!%p141_p9)  ;;  %v1160_v9 = vld [vmem:[%s1903_s1 + $0x11] ss:$0 sm:$0xff] (!%p141_p9) }
  0x11   : > { %v1162_v10 = vld [vmem:[%s1903_s1 + $0x12] ss:$0 sm:$0xff] (!%p141_p9)  ;;  %v1226_v11 = vld [vmem:[%s1903_s1 + $0x31] ss:$0 sm:$0xff] (!%p141_p9)  ;;  %v1195_v13 = vld [vmem:[%s1903_s1 + $0x22] ss:$0 sm:$0xff] (!%p141_p9) }
  0x12   : > { %238 = vrot.lane.b32.xlu0 (!%p141_p9), %v1144_v2, %s1372_s28  ;;  %259 = vrot.lane.b32.xlu1 (!%p141_p9), %v1145_v3, %s1373_s29  ;;  %v1228_v12 = vld [vmem:[%s1903_s1 + $0x32] ss:$0 sm:$0xff] (!%p141_p9)  ;;  %v1201_v14 = vld [vmem:[%s1903_s1 + $0x24] ss:$0 sm:$0xff] (!%p141_p9)  ;;  %s161_s17 = sand.u32 (!%p141_p9), 1, %s1362_s13   ;;  %vm389_vm0 = vcmask (!%p141_p9), 228352  }
  0x13   : > { %v1168_v15 = vld [vmem:[%s1903_s1 + $0x14] ss:$0 sm:$0xff] (!%p141_p9)  ;;  %v1170_v16 = vld [vmem:[%s1903_s1 + $0x15] ss:$0 sm:$0xff] (!%p141_p9)  ;;  %v1203_v18 = vld [vmem:[%s1903_s1 + $0x25] ss:$0 sm:$0xff] (!%p141_p9) }
  0x14   : > { %v1234_v17 = vld [vmem:[%s1903_s1 + $0x34] ss:$0 sm:$0xff] (!%p141_p9)  ;;  %v1236_v19 = vld [vmem:[%s1903_s1 + $0x35] ss:$0 sm:$0xff] (!%p141_p9)  ;;  %v1176_v20 = vld [vmem:[%s1903_s1 + $0x17] ss:$0 sm:$0xff] (!%p141_p9) }
  0x15   : > { %v1209_v21 = vld [vmem:[%s1903_s1 + $0x27] ss:$0 sm:$0xff]  ;;  %v1242_v22 = vld [vmem:[%s1903_s1 + $0x37] ss:$0 sm:$0xff]  ;;  %v1178_v23 = vld [vmem:[%s1903_s1 + $0x18] ss:$0 sm:$0xff] }
  0x16   : > { %292 = vrot.lane.b32.xlu0 %v1149_v4, %s1372_s28  ;;  %313 = vrot.lane.b32.xlu1 %v1150_v5, %s1373_s29  ;;  %v1211_v24 = vld [vmem:[%s1903_s1 + $0x28] ss:$0 sm:$0xff]  ;;  %v1244_v25 = vld [vmem:[%s1903_s1 + $0x38] ss:$0 sm:$0xff]  ;;  %s165_s24 = scalar_select %p164_p10, %s1420_s16, 1 }
  0x17   : > { %v1184_v26 = vld [vmem:[%s1903_s1 + $0x1a] ss:$0 sm:$0xff]  ;;  %v1217_v27 = vld [vmem:[%s1903_s1 + $0x2a] ss:$0 sm:$0xff]  ;;  %v1186_v28 = vld [vmem:[%s1903_s1 + $0x1b] ss:$0 sm:$0xff] }
  0x18   : > { %v1250_v29 = vld [vmem:[%s1903_s1 + $0x3a] ss:$0 sm:$0xff]  ;;  %v1252_v30 = vld [vmem:[%s1903_s1 + $0x3b] ss:$0 sm:$0xff]  ;;  %v1219_v31 = vld [vmem:[%s1903_s1 + $0x2b] ss:$0 sm:$0xff] }
  0x19   : > { %s1261_s25 = sshll.u32 %s165_s24, 6  ;;  %s1135_s24 = sshll.u32 %s161_s17, 6 }
  0x1a   : > { %367 = vrot.lane.b32.xlu1 %v1155_v6, %s1373_s29  ;;  %346 = vrot.lane.b32.xlu0 %v1154_v7, %s1372_s28  ;;  %s1580_s30 = scalar_lea.vmem %s1902_s0, %s1261_s25  ;;  %s1262_s11 = sshll.u32 %s1420_s16, 10 }
  0x1b   : > { %v1583_v32 = vld [vmem:[%s1580_s30] sm:$0xff]  ;;  %v1586_v33 = vld [vmem:[%s1580_s30 + $0x8] sm:$0xff]  ;;  %v1595_v41 = vld [vmem:[%s1580_s30 + $0x10] sm:$0xff]  ;;  %s1851_s27 = scalar_lea.hbm %s1905_s3, %s1262_s11  ;;  %s1861_s16 = scalar_lea.sflag [#allocation3], %s161_s17 }
  0x1c   : > { %v1598_v42 = vld [vmem:[%s1580_s30 + $0x18] sm:$0xff]  ;;  %v1609_v50 = vld [vmem:[%s1580_s30 + $0x20] sm:$0xff]  ;;  %v1612_v51 = vld [vmem:[%s1580_s30 + $0x28] sm:$0xff] }
  0x1d   : > { %v1623_v60 = vld [vmem:[%s1580_s30 + $0x30] sm:$0xff]  ;;  %v1626_v61 = vld [vmem:[%s1580_s30 + $0x38] sm:$0xff] }
  0x1e   : > { %629 = vrot.lane.b32.xlu1 %v1193_v8, %s1372_s28  ;;  %408 = vrot.lane.b32.xlu0 %v1160_v9, %s1372_s28 }
  0x22   : > { %429 = vrot.lane.b32.xlu1 %v1162_v10, %s1373_s29  ;;  %850 = vrot.lane.b32.xlu0 %v1226_v11, %s1372_s28 }
  0x26   : > { %871 = vrot.lane.b32.xlu1 %v1228_v12, %s1373_s29  ;;  %650 = vrot.lane.b32.xlu0 %v1195_v13, %s1373_s29 }
  0x2a   : > { %682 = vrot.lane.b32.xlu1 %v1201_v14, %s1372_s28  ;;  %461 = vrot.lane.b32.xlu0 %v1168_v15, %s1372_s28 }
  0x2e   : > { %482 = vrot.lane.b32.xlu1 %v1170_v16, %s1373_s29  ;;  %903 = vrot.lane.b32.xlu0 %v1234_v17, %s1372_s28 }
  0x32   : > { %703 = vrot.lane.b32.xlu0 %v1203_v18, %s1373_s29  ;;  %924 = vrot.lane.b32.xlu1 %v1236_v19, %s1373_s29 }
  0x36   : > { %514 = vrot.lane.b32.xlu0 %v1176_v20, %s1372_s28  ;;  %735 = vrot.lane.b32.xlu1 %v1209_v21, %s1372_s28 }
  0x3a   : > { %956 = vrot.lane.b32.xlu0 %v1242_v22, %s1372_s28  ;;  %535 = vrot.lane.b32.xlu1 %v1178_v23, %s1373_s29 }
  0x3e   : > { %756 = vrot.lane.b32.xlu0 %v1211_v24, %s1373_s29  ;;  %977 = vrot.lane.b32.xlu1 %v1244_v25, %s1373_s29 }
  0x42   : > { %567 = vrot.lane.b32.xlu0 %v1184_v26, %s1372_s28  ;;  %788 = vrot.lane.b32.xlu1 %v1217_v27, %s1372_s28 }
  0x46   : > { %588 = vrot.lane.b32.xlu1 %v1186_v28, %s1373_s29  ;;  %1009 = vrot.lane.b32.xlu0 %v1250_v29, %s1372_s28  ;;  %s1374_s28 = smov 126  }
  0x4a   : > { %1030 = vrot.lane.b32.xlu1 %v1252_v30, %s1373_s29  ;;  %809 = vrot.lane.b32.xlu0 %v1219_v31, %s1373_s29  ;;  %s1375_s29 = smov 124  }
  0x80   : > { %v185_v34 = vpop.permute.xlu0 %184  ;;  %v206_v35 = vpop.permute.xlu1 %205 }
  0x81   : > { %v187_v36 = vmul.f32 %v185_v34, %v1583_v32  ;;  %v188_v37 = vmul.f32 %v185_v34, %v1586_v33  ;;  %v208_v38 = vmul.f32 %v206_v35, %v1583_v32  ;;  %v209_v39 = vmul.f32 %v206_v35, %v1586_v33 }
  0x83   : > { %193 = vrot.lane.b32.xlu1 %v188_v37, %s1374_s28  ;;  %191 = vrot.lane.b32.xlu0 %v187_v36, %s1374_s28 }
  0x84   : > { %v239_v40 = vpop.permute.xlu0 %238  ;;  %v260_v43 = vpop.permute.xlu1 %259 }
  0x85   : > { %v241_v44 = vmul.f32 %v1595_v41, %v239_v40  ;;  %v242_v45 = vmul.f32 %v1598_v42, %v239_v40  ;;  %v262_v48 = vmul.f32 %v1595_v41, %v260_v43  ;;  %v263_v49 = vmul.f32 %v1598_v42, %v260_v43 }
  0x87   : > { %214 = vrot.lane.b32.xlu1 %v209_v39, %s1375_s29  ;;  %212 = vrot.lane.b32.xlu0 %v208_v38, %s1375_s29 }
  0x88   : > { %v293_v46 = vpop.permute.xlu0 %292  ;;  %v314_v47 = vpop.permute.xlu1 %313 }
  0x89   : > { %v295_v54 = vmul.f32 %v1609_v50, %v293_v46  ;;  %v296_v55 = vmul.f32 %v1612_v51, %v293_v46  ;;  %v316_v58 = vmul.f32 %v1609_v50, %v314_v47  ;;  %v317_v59 = vmul.f32 %v1612_v51, %v314_v47 }
  0x8b   : > { %245 = vrot.lane.b32.xlu1 %v241_v44, %s1374_s28  ;;  %247 = vrot.lane.b32.xlu0 %v242_v45, %s1374_s28 }
  0x8c   : > { %v368_v52 = vpop.permute.xlu1 %367  ;;  %v347_v53 = vpop.permute.xlu0 %346 }
  0x8d   : > { %v349_v63 = vmul.f32 %v1623_v60, %v347_v53  ;;  %v350_v0 = vmul.f32 %v1626_v61, %v347_v53  ;;  %v370_v3 = vmul.f32 %v1623_v60, %v368_v52  ;;  %v371_v4 = vmul.f32 %v1626_v61, %v368_v52 }
  0x8f   : > { %268 = vrot.lane.b32.xlu1 %v263_v49, %s1375_s29  ;;  %266 = vrot.lane.b32.xlu0 %v262_v48, %s1375_s29 }
  0x90   : > { %v630_v56 = vpop.permute.xlu1 %629  ;;  %v409_v57 = vpop.permute.xlu0 %408 }
  0x91   : > { %v411_v6 = vmul.f32 %v409_v57, %v1583_v32  ;;  %v412_v7 = vmul.f32 %v409_v57, %v1586_v33  ;;  %v632_v16 = vmul.f32 %v630_v56, %v1583_v32  ;;  %v633_v17 = vmul.f32 %v630_v56, %v1586_v33 }
  0x93   : > { %299 = vrot.lane.b32.xlu1 %v295_v54, %s1374_s28  ;;  %301 = vrot.lane.b32.xlu0 %v296_v55, %s1374_s28 }
  0x94   : > { %v430_v62 = vpop.permute.xlu1 %429  ;;  %v851_v1 = vpop.permute.xlu0 %850 }
  0x95   : > { %v432_v10 = vmul.f32 %v430_v62, %v1583_v32  ;;  %v433_v11 = vmul.f32 %v430_v62, %v1586_v33  ;;  %v853_v18 = vmul.f32 %v851_v1, %v1583_v32  ;;  %v854_v19 = vmul.f32 %v851_v1, %v1586_v33 }
  0x97   : > { %322 = vrot.lane.b32.xlu1 %v317_v59, %s1375_s29  ;;  %320 = vrot.lane.b32.xlu0 %v316_v58, %s1375_s29 }
  0x98   : > { %v872_v2 = vpop.permute.xlu1 %871  ;;  %v651_v5 = vpop.permute.xlu0 %650 }
  0x99   : > { %v653_v20 = vmul.f32 %v651_v5, %v1583_v32  ;;  %v874_v21 = vmul.f32 %v872_v2, %v1583_v32  ;;  %v654_v22 = vmul.f32 %v651_v5, %v1586_v33  ;;  %v875_v24 = vmul.f32 %v872_v2, %v1586_v33 }
  0x9b   : > { %353 = vrot.lane.b32.xlu1 %v349_v63, %s1374_s28  ;;  %355 = vrot.lane.b32.xlu0 %v350_v0, %s1374_s28 }
  0x9c   : > { %v683_v8 = vpop.permute.xlu1 %682  ;;  %v462_v9 = vpop.permute.xlu0 %461 }
  0x9d   : > { %v464_v12 = vmul.f32 %v1595_v41, %v462_v9  ;;  %v465_v13 = vmul.f32 %v1598_v42, %v462_v9  ;;  %v685_v25 = vmul.f32 %v1595_v41, %v683_v8  ;;  %v686_v27 = vmul.f32 %v1598_v42, %v683_v8 }
  0x9f   : > { %376 = vrot.lane.b32.xlu1 %v371_v4, %s1375_s29  ;;  %374 = vrot.lane.b32.xlu0 %v370_v3, %s1375_s29 }
  0xa0   : > { %v483_v14 = vpop.permute.xlu1 %482  ;;  %v904_v23 = vpop.permute.xlu0 %903 }
  0xa1   : > { %v485_v15 = vmul.f32 %v1595_v41, %v483_v14  ;;  %v906_v26 = vmul.f32 %v1595_v41, %v904_v23  ;;  %v486_v29 = vmul.f32 %v1598_v42, %v483_v14  ;;  %v907_v30 = vmul.f32 %v1598_v42, %v904_v23 }
  0xa3   : > { %417 = vrot.lane.b32.xlu1 %v412_v7, %s1374_s28  ;;  %415 = vrot.lane.b32.xlu0 %v411_v6, %s1374_s28 }
  0xa4   : > { %v704_v28 = vpop.permute.xlu0 %703  ;;  %v925_v35 = vpop.permute.xlu1 %924 }
  0xa5   : > { %v706_v31 = vmul.f32 %v1595_v41, %v704_v28  ;;  %v707_v34 = vmul.f32 %v1598_v42, %v704_v28  ;;  %v927_v36 = vmul.f32 %v1595_v41, %v925_v35  ;;  %v928_v37 = vmul.f32 %v1598_v42, %v925_v35 }
  0xa7   : > { %438 = vrot.lane.b32.xlu1 %v433_v11, %s1375_s29  ;;  %436 = vrot.lane.b32.xlu0 %v432_v10, %s1375_s29  ;;  %v1138_v10 = vld [vmem:[%s1903_s1] ss:$0 sm:$0xff] }
  0xa8   : > { %v515_v38 = vpop.permute.xlu0 %514  ;;  %v736_v43 = vpop.permute.xlu1 %735  ;;  %v177_v11 = vmul.f32 %v1138_v10, %v1586_v33 }
  0xa9   : > { %v517_v39 = vmul.f32 %v1609_v50, %v515_v38  ;;  %v518_v40 = vmul.f32 %v1612_v51, %v515_v38  ;;  %v738_v44 = vmul.f32 %v1609_v50, %v736_v43  ;;  %v739_v45 = vmul.f32 %v1612_v51, %v736_v43 }
  0xab   : > { %470 = vrot.lane.b32.xlu1 %v465_v13, %s1374_s28  ;;  %468 = vrot.lane.b32.xlu0 %v464_v12, %s1374_s28  ;;  %v176_v12 = vmul.f32 %v1138_v10, %v1583_v32 }
  0xac   : > { %v957_v46 = vpop.permute.xlu0 %956  ;;  %v536_v49 = vpop.permute.xlu1 %535 }
  0xad   : > { %v959_v47 = vmul.f32 %v1609_v50, %v957_v46  ;;  %v960_v48 = vmul.f32 %v1612_v51, %v957_v46  ;;  %v538_v52 = vmul.f32 %v1609_v50, %v536_v49  ;;  %v539_v53 = vmul.f32 %v1612_v51, %v536_v49 }
  0xaf   : > { %636 = vrot.lane.b32.xlu1 %v632_v16, %s1374_s28  ;;  %489 = vrot.lane.b32.xlu0 %v485_v15, %s1375_s29 }
  0xb0   : > { %v757_v54 = vpop.permute.xlu0 %756  ;;  %v978_v55 = vpop.permute.xlu1 %977 }
  0xb1   : > { %v759_v56 = vmul.f32 %v1609_v50, %v757_v54  ;;  %v760_v57 = vmul.f32 %v1612_v51, %v757_v54  ;;  %v980_v58 = vmul.f32 %v1609_v50, %v978_v55  ;;  %v981_v59 = vmul.f32 %v1612_v51, %v978_v55 }
  0xb3   : > { %857 = vrot.lane.b32.xlu1 %v853_v18, %s1374_s28  ;;  %638 = vrot.lane.b32.xlu0 %v633_v17, %s1374_s28  ;;  %v1143_v17 = vld [vmem:[%s1903_s1 + $0x3] ss:$0 sm:$0xff] }
  0xb4   : > { %v568_v62 = vpop.permute.xlu0 %567  ;;  %v789_v63 = vpop.permute.xlu1 %788 }
  0xb5   : > { %v570_v0 = vmul.f32 %v1623_v60, %v568_v62  ;;  %v571_v1 = vmul.f32 %v1626_v61, %v568_v62  ;;  %v791_v4 = vmul.f32 %v1623_v60, %v789_v63  ;;  %v792_v5 = vmul.f32 %v1626_v61, %v789_v63 }
  0xb7   : > { %657 = vrot.lane.b32.xlu1 %v653_v20, %s1375_s29  ;;  %859 = vrot.lane.b32.xlu0 %v854_v19, %s1374_s28  ;;  %v228_v20 = vmul.f32 %v1143_v17, %v1595_v41 }
  0xb8   : > { %v589_v2 = vpop.permute.xlu1 %588  ;;  %v1010_v3 = vpop.permute.xlu0 %1009 }
  0xb9   : > { %v1012_v8 = vmul.f32 %v1623_v60, %v1010_v3  ;;  %v1013_v9 = vmul.f32 %v1626_v61, %v1010_v3  ;;  %v591_v13 = vmul.f32 %v1623_v60, %v589_v2  ;;  %v592_v14 = vmul.f32 %v1626_v61, %v589_v2 }
  0xbb   : > { %878 = vrot.lane.b32.xlu1 %v874_v21, %s1375_s29  ;;  %659 = vrot.lane.b32.xlu0 %v654_v22, %s1375_s29  ;;  %v229_v21 = vmul.f32 %v1143_v17, %v1598_v42 }
  0xbc   : > { %v1031_v6 = vpop.permute.xlu1 %1030  ;;  %v810_v7 = vpop.permute.xlu0 %809 }
  0xbd   : > { %v812_v22 = vmul.f32 %v1623_v60, %v810_v7  ;;  %v813_v23 = vmul.f32 %v1626_v61, %v810_v7  ;;  %v1156_v7 = vld [vmem:[%s1904_s2] ss:$0 sm:$0xff] }
  0xbf   : > { %689 = vrot.lane.b32.xlu1 %v685_v25, %s1374_s28  ;;  %880 = vrot.lane.b32.xlu0 %v875_v24, %s1375_s29 }
  0xc3   : > { %910 = vrot.lane.b32.xlu1 %v906_v26, %s1374_s28  ;;  %691 = vrot.lane.b32.xlu0 %v686_v27, %s1374_s28 }
  0xc7   : > { %491 = vrot.lane.b32.xlu1 %v486_v29, %s1375_s29  ;;  %912 = vrot.lane.b32.xlu0 %v907_v30, %s1374_s28  ;;  %v1033_v30 = vmul.f32 %v1623_v60, %v1031_v6 }
  0xcb   : > { %712 = vrot.lane.b32.xlu1 %v707_v34, %s1375_s29  ;;  %710 = vrot.lane.b32.xlu0 %v706_v31, %s1375_s29  ;;  %v1034_v31 = vmul.f32 %v1626_v61, %v1031_v6 }
  0xcf   : > { %933 = vrot.lane.b32.xlu1 %v928_v37, %s1375_s29  ;;  %931 = vrot.lane.b32.xlu0 %v927_v36, %s1375_s29  ;;  %v1148_v36 = vld [vmem:[%s1903_s1 + $0x6] ss:$0 sm:$0xff] }
  0xd3   : > { %523 = vrot.lane.b32.xlu1 %v518_v40, %s1374_s28  ;;  %521 = vrot.lane.b32.xlu0 %v517_v39, %s1374_s28  ;;  %v282_v39 = vmul.f32 %v1148_v36, %v1609_v50  ;;  %v283_v40 = vmul.f32 %v1148_v36, %v1612_v51  ;;  %v1191_v36 = vld [vmem:[%s1903_s1 + $0x20] ss:$0 sm:$0xff] }
  0xd7   : > { %744 = vrot.lane.b32.xlu1 %v739_v45, %s1374_s28  ;;  %742 = vrot.lane.b32.xlu0 %v738_v44, %s1374_s28 }
  0xdb   : > { %965 = vrot.lane.b32.xlu1 %v960_v48, %s1374_s28  ;;  %963 = vrot.lane.b32.xlu0 %v959_v47, %s1374_s28 }
  0xdf   : > { %544 = vrot.lane.b32.xlu1 %v539_v53, %s1375_s29  ;;  %542 = vrot.lane.b32.xlu0 %v538_v52, %s1375_s29  ;;  %v1153_v53 = vld [vmem:[%s1903_s1 + $0x9] ss:$0 sm:$0xff] }
  0xe3   : > { %765 = vrot.lane.b32.xlu1 %v760_v57, %s1375_s29  ;;  %763 = vrot.lane.b32.xlu0 %v759_v56, %s1375_s29  ;;  %v336_v56 = vmul.f32 %v1153_v53, %v1623_v60  ;;  %v337_v57 = vmul.f32 %v1153_v53, %v1626_v61 }
  0xe7   : > { %986 = vrot.lane.b32.xlu1 %v981_v59, %s1375_s29  ;;  %984 = vrot.lane.b32.xlu0 %v980_v58, %s1375_s29 }
  0xeb   : > { %576 = vrot.lane.b32.xlu1 %v571_v1, %s1374_s28  ;;  %574 = vrot.lane.b32.xlu0 %v570_v0, %s1374_s28 }
  0xef   : > { %797 = vrot.lane.b32.xlu1 %v792_v5, %s1374_s28  ;;  %795 = vrot.lane.b32.xlu0 %v791_v4, %s1374_s28  ;;  %v1158_v4 = vld [vmem:[%s1903_s1 + $0x10] ss:$0 sm:$0xff] }
  0xf3   : > { %1018 = vrot.lane.b32.xlu1 %v1013_v9, %s1374_s28  ;;  %1016 = vrot.lane.b32.xlu0 %v1012_v8, %s1374_s28  ;;  %s1768_s28 = scalar_lea.vmem [#allocation2], %s1135_s24 }
  0xf4   : > { %s1069_s19 = sshll.u32 %s1768_s28, 4  ;;  %s1853_s19 = int_to_ptr.vmem [resolvable:$true] %s1069_s19 }
  0xf5   : > { %v194_v15 = vpop.permute.xlu1 %193  ;;  %v192_v16 = vpop.permute.xlu0 %191  ;;  %s1308_s30 = scalar_lea.vmem %s1853_s19, 1024 }
  0xf6   : > { %v198_v18 = vadd.f32 %v194_v15, %v177_v11  ;;  %v197_v19 = vadd.f32 %v192_v16, %v176_v12  ;;  %v401_v12 = vmul.f32 %v1158_v4, %v1586_v33  ;;  %p1309_p11 = scmp.ne.s32.totalorder %s1853_s19, %s1308_s30 }
  0xf7   : > { %597 = vrot.lane.b32.xlu1 %v592_v14, %s1375_s29  ;;  %595 = vrot.lane.b32.xlu0 %v591_v13, %s1375_s29  ;;  %v400_v13 = vmul.f32 %v1158_v4, %v1583_v32 }
  0xf8   : > { %p1310_p12 = pnand %p1309_p11, %p1437_p5 }
  0xf9   : > { %v215_v24 = vpop.permute.xlu1 %214  ;;  %v213_v25 = vpop.permute.xlu0 %212 }
  0xfa   : > { %v219_v26 = vadd.f32 %v215_v24, %v198_v18  ;;  %v218_v27 = vadd.f32 %v213_v25, %v197_v19  ;;  %v1166_v18 = vld [vmem:[%s1903_s1 + $0x13] ss:$0 sm:$0xff]  ;;  %p1311_p13 = pneg %p1310_p12 }
  0xfb   : > { %818 = vrot.lane.b32.xlu1 %v813_v23, %s1375_s29  ;;  %816 = vrot.lane.b32.xlu0 %v812_v22, %s1375_s29  ;;  %v451_v22 = vmul.f32 %v1166_v18, %v1595_v41 }
  0xfc   : > { %v230_v28 = vadd.f32 %v228_v20, %v218_v27  ;;  %v231_v29 = vadd.f32 %v229_v21, %v219_v26  ;;  %v452_v21 = vmul.f32 %v1166_v18, %v1598_v42 }
  0xfd   : > { %v246_v34 = vpop.permute.xlu1 %245  ;;  %v248_v35 = vpop.permute.xlu0 %247 }
  0xfe   : > { %v251_v37 = vadd.f32 %v246_v34, %v230_v28  ;;  %v252_v38 = vadd.f32 %v248_v35, %v231_v29 }
  0xff   : > { %1039 = vrot.lane.b32.xlu1 %v1034_v31, %s1375_s29  ;;  %1037 = vrot.lane.b32.xlu0 %v1033_v30, %s1375_s29  ;;  %v1174_v31 = vld [vmem:[%s1903_s1 + $0x16] ss:$0 sm:$0xff]  ;;  %s1376_s29 = smov [#allocation2]  }
 0x100   : > { %v504_v35 = vmul.f32 %v1174_v31, %v1609_v50  ;;  %s1312_s4 = sshll.u32 %s1376_s29, 4  ;;  %s1313_s4 = int_to_ptr.vmem [resolvable:$false] %s1312_s4 }
 0x101   : > { %v269_v43 = vpop.permute.xlu1 %268  ;;  %v267_v44 = vpop.permute.xlu0 %266  ;;  %s1314_s5 = scalar_lea.vmem %s1313_s4, 2048  ;;  %p1315_p0 = scmp.lt.s32.totalorder %s1853_s19, %s1313_s4 }
 0x102   : > { %v273_v45 = vadd.f32 %v269_v43, %v252_v38  ;;  %v272_v46 = vadd.f32 %v267_v44, %v251_v37  ;;  %v1224_v44 = vld [vmem:[%s1903_s1 + $0x30] ss:$0 sm:$0xff]  ;;  %p1316_p1 = scmp.lt.s32.totalorder %s1314_s5, %s1308_s30 }
 0x104   : > { %v284_v47 = vadd.f32 %v282_v39, %v272_v46  ;;  %v285_v48 = vadd.f32 %v283_v40, %v273_v45  ;;  %v621_v40 = vmul.f32 %v1191_v36, %v1583_v32  ;;  %p1317_p2 = por %p1316_p1, %p1315_p0 }
 0x105   : > { %v300_v49 = vpop.permute.xlu1 %299  ;;  %v302_v52 = vpop.permute.xlu0 %301 }
 0x106   : > { %v305_v54 = vadd.f32 %v300_v49, %v284_v47  ;;  %v306_v55 = vadd.f32 %v302_v52, %v285_v48  ;;  %v1199_v47 = vld [vmem:[%s1903_s1 + $0x23] ss:$0 sm:$0xff]  ;;  %v842_v49 = vmul.f32 %v1224_v44, %v1583_v32  ;;  %v622_v52 = vmul.f32 %v1191_v36, %v1586_v33  ;;  %p1318_p3 = pnand %p1317_p2, %p1311_p13 }
 0x107   : > { %v672_v53 = vmul.f32 %v1199_v47, %v1595_v41  ;;  %v673_v32 = vmul.f32 %v1199_v47, %v1598_v42 }
 0x109   : > { %v323_v58 = vpop.permute.xlu1 %322  ;;  %v321_v59 = vpop.permute.xlu0 %320 }
 0x10a   : > { %v327_v62 = vadd.f32 %v323_v58, %v306_v55  ;;  %v326_v63 = vadd.f32 %v321_v59, %v305_v54  ;;  %v1232_v54 = vld [vmem:[%s1903_s1 + $0x33] ss:$0 sm:$0xff]  ;;  %v843_v58 = vmul.f32 %v1224_v44, %v1586_v33 }
 0x10b   : > { %v893_v59 = vmul.f32 %v1232_v54, %v1595_v41 }
 0x10c   : > { %v338_v0 = vadd.f32 %v336_v56, %v326_v63  ;;  %v339_v1 = vadd.f32 %v337_v57, %v327_v62 }
 0x10d   : > { %v354_v2 = vpop.permute.xlu1 %353  ;;  %v356_v3 = vpop.permute.xlu0 %355 }
 0x10e   : > { %v359_v5 = vadd.f32 %v354_v2, %v338_v0  ;;  %v360_v6 = vadd.f32 %v356_v3, %v339_v1 }
 0x111   : > { %v377_v8 = vpop.permute.xlu1 %376  ;;  %v375_v9 = vpop.permute.xlu0 %374 }
 0x112   : > { %v381_v10 = vadd.f32 %v377_v8, %v360_v6  ;;  %v380_v11 = vadd.f32 %v375_v9, %v359_v5  ;;  %v894_v8 = vmul.f32 %v1232_v54, %v1598_v42 }
 0x114   : > { %v388_v14 = vadd.f32 %v1156_v7, %v381_v10  ;;  %v387_v15 = vadd.f32 %v1156_v7, %v380_v11 }
 0x115   : > { %v418_v16 = vpop.permute.xlu1 %417  ;;  %v416_v17 = vpop.permute.xlu0 %415 }
 0x116   : > { %391 = vst.msk [vmem:[%s1768_s28 + $0x8] sm:$0xff] %vm389_vm0, %v388_v14  ;;  %390 = vst.msk [vmem:[%s1768_s28] sm:$0xff] %vm389_vm0, %v387_v15  ;;  %v422_v19 = vadd.f32 %v418_v16, %v401_v12  ;;  %v421_v20 = vadd.f32 %v416_v17, %v400_v13  ;;  %v505_v14 = vmul.f32 %v1174_v31, %v1612_v51  ;;  %v1207_v15 = vld [vmem:[%s1903_s1 + $0x26] ss:$0 sm:$0xff] }
 0x119   : > { %v439_v23 = vpop.permute.xlu1 %438  ;;  %v437_v24 = vpop.permute.xlu0 %436 }
 0x11a   : > { %v443_v25 = vadd.f32 %v439_v23, %v422_v19  ;;  %v442_v26 = vadd.f32 %v437_v24, %v421_v20  ;;  %v726_v19 = vmul.f32 %v1207_v15, %v1612_v51  ;;  %v1240_v23 = vld [vmem:[%s1903_s1 + $0x36] ss:$0 sm:$0xff] }
 0x11c   : > { %v454_v27 = vadd.f32 %v452_v21, %v443_v25  ;;  %v453_v28 = vadd.f32 %v451_v22, %v442_v26  ;;  %v725_v22 = vmul.f32 %v1207_v15, %v1609_v50 }
 0x11d   : > { %v471_v29 = vpop.permute.xlu1 %470  ;;  %v469_v30 = vpop.permute.xlu0 %468 }
 0x11e   : > { %v474_v34 = vadd.f32 %v469_v30, %v453_v28  ;;  %v475_v13 = vadd.f32 %v471_v29, %v454_v27  ;;  %v947_v28 = vmul.f32 %v1240_v23, %v1612_v51  ;;  %v946_v29 = vmul.f32 %v1240_v23, %v1609_v50 }
 0x121   : > { %v637_v37 = vpop.permute.xlu1 %636  ;;  %v490_v38 = vpop.permute.xlu0 %489 }
 0x122   : > { %v495_v39 = vadd.f32 %v490_v38, %v474_v34  ;;  %v642_v48 = vadd.f32 %v637_v37, %v621_v40 }
 0x124   : > { %v1784_v43 = vadd.f32 %v504_v35, %v495_v39 }
 0x125   : > { %v858_v45 = vpop.permute.xlu1 %857  ;;  %v639_v46 = vpop.permute.xlu0 %638 }
 0x126   : > { %v863_v62 = vadd.f32 %v858_v45, %v842_v49  ;;  %v643_v63 = vadd.f32 %v639_v46, %v622_v52 }
 0x129   : > { %v658_v55 = vpop.permute.xlu1 %657  ;;  %v860_v56 = vpop.permute.xlu0 %859 }
 0x12a   : > { %v663_v57 = vadd.f32 %v658_v55, %v642_v48  ;;  %v864_v5 = vadd.f32 %v860_v56, %v843_v58 }
 0x12c   : > { %v674_v0 = vadd.f32 %v672_v53, %v663_v57 }
 0x12d   : > { %v879_v1 = vpop.permute.xlu1 %878  ;;  %v660_v2 = vpop.permute.xlu0 %659 }
 0x12e   : > { %v884_v3 = vadd.f32 %v879_v1, %v863_v62  ;;  %v664_v4 = vadd.f32 %v660_v2, %v643_v63 }
 0x130   : > { %v895_v6 = vadd.f32 %v893_v59, %v884_v3  ;;  %v675_v7 = vadd.f32 %v673_v32, %v664_v4  ;;  %v1182_v59 = vld [vmem:[%s1903_s1 + $0x19] ss:$0 sm:$0xff] }
 0x131   : > { %v690_v9 = vpop.permute.xlu1 %689  ;;  %v881_v10 = vpop.permute.xlu0 %880  ;;  %v558_v3 = vmul.f32 %v1182_v59, %v1626_v61  ;;  %v557_v4 = vmul.f32 %v1182_v59, %v1623_v60 }
 0x132   : > { %v885_v11 = vadd.f32 %v881_v10, %v864_v5  ;;  %v695_v20 = vadd.f32 %v690_v9, %v674_v0  ;;  %v1215_v5 = vld [vmem:[%s1903_s1 + $0x29] ss:$0 sm:$0xff] }
 0x133   : > { %v779_v10 = vmul.f32 %v1215_v5, %v1626_v61 }
 0x134   : > { %v896_v33 = vadd.f32 %v894_v8, %v885_v11 }
 0x135   : > { %v911_v12 = vpop.permute.xlu1 %910  ;;  %v692_v41 = vpop.permute.xlu0 %691 }
 0x136   : > { %v696_v42 = vadd.f32 %v692_v41, %v675_v7  ;;  %v916_v30 = vadd.f32 %v911_v12, %v895_v6 }
 0x139   : > { %v492_v16 = vpop.permute.xlu1 %491  ;;  %v913_v17 = vpop.permute.xlu0 %912 }
 0x13a   : > { %v496_v18 = vadd.f32 %v492_v16, %v475_v13  ;;  %v917_v31 = vadd.f32 %v913_v17, %v896_v33  ;;  %v1248_v13 = vld [vmem:[%s1903_s1 + $0x39] ss:$0 sm:$0xff] }
 0x13c   : > { %v507_v21 = vadd.f32 %v505_v14, %v496_v18 }
 0x13d   : > { %v713_v24 = vpop.permute.xlu1 %712  ;;  %v711_v25 = vpop.permute.xlu0 %710 }
 0x13e   : > { %v717_v26 = vadd.f32 %v713_v24, %v696_v42  ;;  %v716_v27 = vadd.f32 %v711_v25, %v695_v20  ;;  %v1000_v20 = vmul.f32 %v1248_v13, %v1626_v61  ;;  %v999_v42 = vmul.f32 %v1248_v13, %v1623_v60 }
 0x140   : > { %v728_v34 = vadd.f32 %v726_v19, %v717_v26  ;;  %v727_v35 = vadd.f32 %v725_v22, %v716_v27 }
 0x141   : > { %v934_v36 = vpop.permute.xlu1 %933  ;;  %v932_v37 = vpop.permute.xlu0 %931 }
 0x142   : > { %v938_v38 = vadd.f32 %v934_v36, %v917_v31  ;;  %v937_v39 = vadd.f32 %v932_v37, %v916_v30 }
 0x144   : > { %v949_v40 = vadd.f32 %v947_v28, %v938_v38  ;;  %v948_v44 = vadd.f32 %v946_v29, %v937_v39 }
 0x145   : > { %v524_v45 = vpop.permute.xlu1 %523  ;;  %v522_v46 = vpop.permute.xlu0 %521 }
 0x146   : > { %v528_v62 = vadd.f32 %v524_v45, %v507_v21  ;;  %v527_v63 = vadd.f32 %v522_v46, %v1784_v43  ;;  %v778_v43 = vmul.f32 %v1215_v5, %v1623_v60  ;;  %v1187_v21 = vld [vmem:[%s1904_s2 + $0x1] ss:$0 sm:$0xff]  ;;  %v1220_v60 = vld [vmem:[%s1904_s2 + $0x2] ss:$0 sm:$0xff]  ;;  %v1253_v46 = vld [vmem:[%s1904_s2 + $0x3] ss:$0 sm:$0xff] }
 0x149   : > { %v745_v47 = vpop.permute.xlu1 %744  ;;  %v743_v48 = vpop.permute.xlu0 %742 }
 0x14a   : > { %v749_v6 = vadd.f32 %v745_v47, %v728_v34  ;;  %v748_v7 = vadd.f32 %v743_v48, %v727_v35 }
 0x14d   : > { %v966_v49 = vpop.permute.xlu1 %965  ;;  %v964_v52 = vpop.permute.xlu0 %963 }
 0x14e   : > { %v970_v14 = vadd.f32 %v966_v49, %v949_v40  ;;  %v969_v15 = vadd.f32 %v964_v52, %v948_v44 }
 0x151   : > { %v545_v53 = vpop.permute.xlu1 %544  ;;  %v543_v51 = vpop.permute.xlu0 %542 }
 0x152   : > { %v549_v1 = vadd.f32 %v545_v53, %v528_v62  ;;  %v548_v2 = vadd.f32 %v543_v51, %v527_v63 }
 0x154   : > { %v560_v12 = vadd.f32 %v558_v3, %v549_v1  ;;  %v559_v41 = vadd.f32 %v557_v4, %v548_v2 }
 0x155   : > { %v766_v54 = vpop.permute.xlu1 %765  ;;  %v764_v50 = vpop.permute.xlu0 %763 }
 0x156   : > { %v770_v8 = vadd.f32 %v766_v54, %v749_v6  ;;  %v769_v9 = vadd.f32 %v764_v50, %v748_v7 }
 0x158   : > { %v781_v18 = vadd.f32 %v779_v10, %v770_v8  ;;  %v780_v19 = vadd.f32 %v778_v43, %v769_v9 }
 0x159   : > { %v987_v55 = vpop.permute.xlu1 %986  ;;  %v985_v56 = vpop.permute.xlu0 %984 }
 0x15a   : > { %v991_v24 = vadd.f32 %v987_v55, %v970_v14  ;;  %v990_v25 = vadd.f32 %v985_v56, %v969_v15 }
 0x15c   : > { %v1002_v35 = vadd.f32 %v1000_v20, %v991_v24  ;;  %v1001_v36 = vadd.f32 %v999_v42, %v990_v25 }
 0x15d   : > { %v577_v57 = vpop.permute.xlu1 %576  ;;  %v575_v58 = vpop.permute.xlu0 %574 }
 0x15e   : > { %v581_v16 = vadd.f32 %v577_v57, %v560_v12  ;;  %v580_v17 = vadd.f32 %v575_v58, %v559_v41 }
 0x161   : > { %v798_v0 = vpop.permute.xlu1 %797  ;;  %v796_v32 = vpop.permute.xlu0 %795 }
 0x162   : > { %v802_v28 = vadd.f32 %v798_v0, %v781_v18  ;;  %v801_v29 = vadd.f32 %v796_v32, %v780_v19 }
 0x165   : > { %v1019_v11 = vpop.permute.xlu1 %1018  ;;  %v1017_v33 = vpop.permute.xlu0 %1016 }
 0x166   : > { %v1023_v39 = vadd.f32 %v1019_v11, %v1002_v35  ;;  %v1022_v40 = vadd.f32 %v1017_v33, %v1001_v36 }
 0x169   : > { %v598_v22 = vpop.permute.xlu1 %597  ;;  %v596_v23 = vpop.permute.xlu0 %595 }
 0x16a   : > { %v602_v26 = vadd.f32 %v598_v22, %v581_v16  ;;  %v601_v27 = vadd.f32 %v596_v23, %v580_v17 }
 0x16c   : > { %v609_v30 = vadd.f32 %v1187_v21, %v602_v26  ;;  %v608_v61 = vadd.f32 %v1187_v21, %v601_v27 }
 0x16d   : > { %v819_v31 = vpop.permute.xlu1 %818  ;;  %v817_v34 = vpop.permute.xlu0 %816 }
 0x16e   : > { %1189 = vst.msk [vmem:[%s1768_s28 + $0x18] sm:$0xff] %vm389_vm0, %v609_v30  ;;  %1188 = vst.msk [vmem:[%s1768_s28 + $0x10] sm:$0xff] %vm389_vm0, %v608_v61  ;;  %v823_v37 = vadd.f32 %v819_v31, %v802_v28  ;;  %v822_v38 = vadd.f32 %v817_v34, %v801_v29 }
 0x170   : > { %v830_v44 = vadd.f32 %v1220_v60, %v823_v37  ;;  %v829_v45 = vadd.f32 %v1220_v60, %v822_v38 }
 0x171   : > { %v1040_v47 = vpop.permute.xlu1 %1039  ;;  %v1038_v48 = vpop.permute.xlu0 %1037 }
 0x172   : > { %1222 = vst.msk [vmem:[%s1768_s28 + $0x28] sm:$0xff] %vm389_vm0, %v830_v44  ;;  %1221 = vst.msk [vmem:[%s1768_s28 + $0x20] sm:$0xff] %vm389_vm0, %v829_v45  ;;  %v1044_v49 = vadd.f32 %v1040_v47, %v1023_v39  ;;  %v1043_v52 = vadd.f32 %v1038_v48, %v1022_v40 }
 0x174   : > { %v1051_v53 = vadd.f32 %v1253_v46, %v1044_v49  ;;  %v1050_v51 = vadd.f32 %v1253_v46, %v1043_v52 }
 0x176   : > { %1255 = vst.msk [vmem:[%s1768_s28 + $0x38] sm:$0xff] %vm389_vm0, %v1051_v53  ;;  %1254 = vst.msk [vmem:[%s1768_s28 + $0x30] sm:$0xff] %vm389_vm0, %v1050_v51 }
 0x177   : > { %1321 = shalt.err (!%p1318_p3)
}
 0x178   : > { %s1322_s17 = scalar_lea.hbm %s1851_s27, 1024  ;;  %s1326_s7 = scalar_lea.hbm %s1905_s3, 2048 }
 0x179   : > { %p1323_p4 = scmp.ne.s32.totalorder %s1851_s27, %s1322_s17  ;;  %p1327_p9 = scmp.lt.u32.totalorder %s1851_s27, %s1905_s3 }
 0x17a   : > { %p1328_p10 = scmp.lt.u32.totalorder %s1326_s7, %s1322_s17  ;;  %p1330_p12 = scmp.lt.u32.totalorder %s1322_s17, %s1851_s27 }
 0x17b   : > { %p1324_p7 = pnand %p1323_p4, %p1437_p5 }
 0x17c   : > { %p1329_p11 = por %p1328_p10, %p1327_p9 }
 0x17d   : > { %p1325_p8 = pneg %p1324_p7 }
 0x17e   : > { %p1331_p13 = por %p1330_p12, %p1329_p11 }
 0x180   : > { %p1332_p0 = pnand %p1331_p13, %p1325_p8 }
 0x182   : > { %1335 = shalt.err (!%p1332_p0)
}
 0x183   : > { %s1377_s10 = smov 128   ;;  %s1378_s11 = smov 8  }
 0x184   : > { %1263 = dma.vmem_to_hbm [thread:$0]  (%p1437_p5), %s1853_s19, 1024, %s1851_s27, %s1861_s16, %s1377_s10, %s1377_s10, %s1378_s11  }
 0x185 PF: > { %p1269_p1 = scmp.ge.s32.totalorder %s1370_s15, 2  ;;  %s1084_s20 = sand.u32 1, %s1358_s12  }
 0x186   : > { %s1085_s24 = scalar_lea.sflag [#allocation3], %s1084_s20 }
 0x187   : > { %p1266_p2 = pnand %p1269_p1, %p1441_p6 }
 0x189   : > { %1353 = dma.done.wait (!%p1266_p2), %s1085_s24, 1024  }
 0x18a   : > { %1355 = vsyncadd (!%p1266_p2), %s1085_s24, 4294966272  ;;  %p13_p3 = scmp.ge.s32.totalorder %s1424_s18, 4   ;;  %s1908_s12 = smov %s1362_s13 }
 0x18b   : > { %s1909_s13 = smov %s1366_s14  ;;  %s1910_s14 = smov %s1435_s21 }
 0x18c   : > { %s1911_s15 = smov %s1424_s18  ;;  %15 = sbr.rel (!%p13_p3) target bundleno = 3 (0x3), region = 76 }
 0x193   :  { %1090 = vsyncpa [#allocation3], 1 }
 0x194   :  { %1092 = vsyncpa [#allocation3 + $0x1], 1 }

</bundles_post_ra>
